<compile_context>
chip_gen: v6e
topology: v6e:2x2x1
jax: 0.10.0
libtpu: 0.0.40
codegen_flags: <defaults>
</compile_context>

<pallas_src>
import jax
import jax.numpy as jnp
from jax.experimental import pallas as pl
from jax.experimental.pallas import tpu as pltpu


def _lstm_kernel(gx_ref, len_ref, h0_ref, c0_ref, whh_ref, wp_ref, bp_ref,
                 out_ref, hid_ref):
    T, Bb, G = gx_ref.shape                 # time-major precomputed input gates (T, Bb, 4H)
    H = whh_ref.shape[0]
    O = bp_ref.shape[-1]

    whh = whh_ref[...]                      # (H, 4H): resident in vregs across the loop
    len_v = len_ref[...]                    # (Bb, 1) int32
    # Static lane mask for the "g" (cell-candidate) gate, hoisted out of the loop.
    lane = jax.lax.broadcasted_iota(jnp.int32, (Bb, G), 1)
    g_lane = (lane >= 2 * H) & (lane < 3 * H)

    def step(t, carry):
        h_prev, c_prev = carry
        # Only recurrent matmul on the critical path; input gates are precomputed.
        gates = gx_ref[t] + jnp.dot(h_prev, whh,
                                    preferred_element_type=jnp.float32)   # (Bb, 4H)
        # Full-vreg nonlinearities (EUP slot), tanh selected for the g-gate lanes.
        act = jnp.where(g_lane, jnp.tanh(gates), jax.nn.sigmoid(gates))
        i_g = act[:, 0 * H:1 * H]
        f_g = act[:, 1 * H:2 * H]
        g_g = act[:, 2 * H:3 * H]
        o_g = act[:, 3 * H:4 * H]
        c_new = f_g * c_prev + i_g * g_g
        h_new = o_g * jnp.tanh(c_new)

        mask = t < len_v                                    # (Bb, 1) packed-seq validity
        hid_ref[t] = jnp.where(mask, h_new, 0.0)            # pad_packed_sequence emits zeros
        return (jnp.where(mask, h_new, h_prev),             # freeze state past each length
                jnp.where(mask, c_new, c_prev))

    jax.lax.fori_loop(0, T, step, (h0_ref[...], c0_ref[...]), unroll=(T <= 32))

    # proj_out + tanh, hoisted out of the recurrence: one (T*Bb, H) @ (H, O) matmul.
    hid2d = hid_ref[...].reshape(T * Bb, H)
    proj = jnp.dot(hid2d, wp_ref[...], preferred_element_type=jnp.float32) + bp_ref[...]
    out_ref[...] = jnp.tanh(proj).reshape(T, Bb, O)


def corrector_lstm_forward(x_btd, lengths, h0, c0, params):
    """x_btd: (B, T, D); lengths: (B,) int; h0/c0: (1, B, H).

    Returns (correct_amount (B, T, O), hidden (B, T, H)) -- matches CorrectorLSTM.forward.
    """
    Wih, Whh, bih, bhh, Wp, bp = (params[k] for k in
                                  ("Wih", "Whh", "bih", "bhh", "Wp", "bp"))
    B, T, D = x_btd.shape
    H = Whh.shape[1]
    O = Wp.shape[0]

    BB = 8                                   # batch tile = f32 sublane minimum
    B_pad = ((B + BB - 1) // BB) * BB
    pad = B_pad - B

    x = x_btd.astype(jnp.float32)
    len_i = lengths.astype(jnp.int32)
    h0_2d = h0.reshape(B, H).astype(jnp.float32)
    c0_2d = c0.reshape(B, H).astype(jnp.float32)
    if pad:
        x = jnp.pad(x, ((0, pad), (0, 0), (0, 0)))
        len_i = jnp.pad(len_i, (0, pad))     # length 0 -> frozen state, zero hidden
        h0_2d = jnp.pad(h0_2d, ((0, pad), (0, 0)))
        c0_2d = jnp.pad(c0_2d, ((0, pad), (0, 0)))

    # Hoisted input projection with folded biases, emitted directly time-major (T, B_pad, 4H).
    bias = (bih + bhh).astype(jnp.float32)
    gx = jnp.einsum("btd,gd->tbg", x, Wih.astype(jnp.float32)) + bias

    len2d = len_i.reshape(B_pad, 1)
    whh_t = Whh.T.astype(jnp.float32)        # (H, 4H)
    wp_t = Wp.T.astype(jnp.float32)          # (H, O)
    bp2d = bp.reshape(1, O).astype(jnp.float32)

    nb = B_pad // BB
    grid_spec = pltpu.PrefetchScalarGridSpec(
        num_scalar_prefetch=0,
        grid=(nb,),                                           # independent batch tiles
        in_specs=[
            pl.BlockSpec((T, BB, 4 * H), lambda b: (0, b, 0)),  # gates_x (time-major)
            pl.BlockSpec((BB, 1),        lambda b: (b, 0)),     # lengths
            pl.BlockSpec((BB, H),        lambda b: (b, 0)),     # h0
            pl.BlockSpec((BB, H),        lambda b: (b, 0)),     # c0
            pl.BlockSpec((H, 4 * H),     lambda b: (0, 0)),     # W_hh^T
            pl.BlockSpec((H, O),         lambda b: (0, 0)),     # W_proj^T
            pl.BlockSpec((1, O),         lambda b: (0, 0)),     # b_proj
        ],
        out_specs=[
            pl.BlockSpec((T, BB, O), lambda b: (0, b, 0)),      # correct_amount (time-major)
            pl.BlockSpec((T, BB, H), lambda b: (0, b, 0)),      # hidden         (time-major)
        ],
    )

    out_tbo, hid_tbh = pl.pallas_call(
        _lstm_kernel,
        out_shape=(jax.ShapeDtypeStruct((T, B_pad, O), jnp.float32),
                   jax.ShapeDtypeStruct((T, B_pad, H), jnp.float32)),
        grid_spec=grid_spec,
        compiler_params=pltpu.CompilerParams(
            dimension_semantics=("parallel",)),   # batch tiles independent -> v7x megacore
    )(gx, len2d, h0_2d, c0_2d, whh_t, wp_t, bp2d)

    # Back to the module's batch-first layout; drop padded batch rows.
    correct_amount = jnp.transpose(out_tbo[:, :B, :], (1, 0, 2))   # (B, T, O)
    hidden = jnp.transpose(hid_tbh[:, :B, :], (1, 0, 2))           # (B, T, H)
    return correct_amount, hidden


def _reference_forward(x, lengths, h0, c0, params):
    """Pure-JAX reference mirroring packed PyTorch LSTM + Linear + tanh."""
    Wih, Whh, bih, bhh, Wp, bp = (params[k] for k in
                                  ("Wih", "Whh", "bih", "bhh", "Wp", "bp"))
    B, T, D = x.shape
    H = Whh.shape[1]
    h = h0.reshape(B, H)
    c = c0.reshape(B, H)

    def step(carry, t):
        h, c = carry
        x_t = x[:, t, :]
        gates = x_t @ Wih.T + bih + h @ Whh.T + bhh
        i = jax.nn.sigmoid(gates[:, :H])
        f = jax.nn.sigmoid(gates[:, H:2 * H])
        g = jnp.tanh(gates[:, 2 * H:3 * H])
        o = jax.nn.sigmoid(gates[:, 3 * H:])
        c_new = f * c + i * g
        h_new = o * jnp.tanh(c_new)
        mask = (t < lengths)[:, None].astype(x.dtype)
        h = mask * h_new + (1 - mask) * h
        c = mask * c_new + (1 - mask) * c
        return (h, c), mask * h_new

    (_, _), hs = jax.lax.scan(step, (h, c), jnp.arange(T))
    hidden = jnp.transpose(hs, (1, 0, 2))
    correct = jnp.tanh(hidden @ Wp.T + bp)
    return correct, hidden


def _init_params(key, input_dim, hidden_dim, output_dim):
    ks = jax.random.split(key, 6)
    scale = 1.0 / jnp.sqrt(hidden_dim)
    return dict(
        Wih=jax.random.uniform(ks[0], (4 * hidden_dim, input_dim), jnp.float32, -scale, scale),
        Whh=jax.random.uniform(ks[1], (4 * hidden_dim, hidden_dim), jnp.float32, -scale, scale),
        bih=jax.random.uniform(ks[2], (4 * hidden_dim,), jnp.float32, -scale, scale),
        bhh=jax.random.uniform(ks[3], (4 * hidden_dim,), jnp.float32, -scale, scale),
        Wp=jax.random.uniform(ks[4], (output_dim, hidden_dim), jnp.float32, -scale, scale),
        bp=jax.random.uniform(ks[5], (output_dim,), jnp.float32, -scale, scale),
    )


if __name__ == "__main__":
    B, T, D, H, O = 4, 8, 16, 32, 16

    key = jax.random.PRNGKey(0)
    k_x, k_h, k_c, k_p = jax.random.split(key, 4)

    x = jax.random.normal(k_x, (B, T, D), jnp.float32)
    h0 = jax.random.normal(k_h, (1, B, H), jnp.float32)
    c0 = jax.random.normal(k_c, (1, B, H), jnp.float32)
    lengths = jnp.array([8, 6, 5, 3], dtype=jnp.int32)   # sorted descending (pack_padded_sequence)
    params = _init_params(k_p, D, H, O)

    correct_amount, hidden = corrector_lstm_forward(x, lengths, h0, c0, params)
    jax.block_until_ready((correct_amount, hidden))

    ref_correct, ref_hidden = _reference_forward(x, lengths, h0, c0, params)
    assert correct_amount.shape == (B, T, O) and hidden.shape == (B, T, H)
    assert jnp.allclose(correct_amount, ref_correct, atol=2e-5, rtol=2e-5)
    assert jnp.allclose(hidden, ref_hidden, atol=2e-5, rtol=2e-5)

    print("KERNEL_OK")
</pallas_src>

<mosaic_0001>
module attributes {stable_mosaic.version = 11 : i64} {
  func.func @_lstm_kernel(%arg0: i32, %arg1: memref<8x8x128xf32, #tpu.memory_space<vmem>>, %arg2: memref<8x1xi32, #tpu.memory_space<vmem>>, %arg3: memref<8x32xf32, #tpu.memory_space<vmem>>, %arg4: memref<8x32xf32, #tpu.memory_space<vmem>>, %arg5: memref<32x128xf32, #tpu.memory_space<vmem>>, %arg6: memref<32x16xf32, #tpu.memory_space<vmem>>, %arg7: memref<1x16xf32, #tpu.memory_space<vmem>>, %arg8: memref<8x8x16xf32, #tpu.memory_space<vmem>>, %arg9: memref<8x8x32xf32, #tpu.memory_space<vmem>>) attributes {dimension_semantics = [#tpu.dimension_semantics<parallel>], iteration_bounds = array<i64: 1>, scalar_prefetch = 0 : i64, scratch_operands = 0 : i64, tpu.core_type = #tpu.core_type<tc>, window_params = [{transform_indices = @transform_0, window_bounds = array<i64: 8, 8, 128>}, {transform_indices = @transform_1, window_bounds = array<i64: 8, 1>}, {transform_indices = @transform_2, window_bounds = array<i64: 8, 32>}, {transform_indices = @transform_3, window_bounds = array<i64: 8, 32>}, {pipeline_mode = #tpu.pipeline_mode<synchronous>, transform_indices = @transform_4, window_bounds = array<i64: 32, 128>}, {pipeline_mode = #tpu.pipeline_mode<synchronous>, transform_indices = @transform_5, window_bounds = array<i64: 32, 16>}, {pipeline_mode = #tpu.pipeline_mode<synchronous>, transform_indices = @transform_6, window_bounds = array<i64: 1, 16>}, {transform_indices = @transform_7, window_bounds = array<i64: 8, 8, 16>}, {transform_indices = @transform_8, window_bounds = array<i64: 8, 8, 32>}]} {
    %c0 = arith.constant 0 : index
    %c0_0 = arith.constant 0 : index
    %0 = vector.load %arg5[%c0, %c0_0] : memref<32x128xf32, #tpu.memory_space<vmem>>, vector<32x128xf32>
    %c0_1 = arith.constant 0 : index
    %c0_2 = arith.constant 0 : index
    %1 = vector.load %arg2[%c0_1, %c0_2] : memref<8x1xi32, #tpu.memory_space<vmem>>, vector<8x1xi32>
    %2 = tpu.iota {dimensions = array<i32: 1>} : vector<8x128xi32>
    %c64_i32 = arith.constant 64 : i32
    %3 = vector.broadcast %c64_i32 : i32 to vector<8x128xi32>
    %4 = arith.cmpi sge, %2, %3 : vector<8x128xi32>
    %c96_i32 = arith.constant 96 : i32
    %5 = vector.broadcast %c96_i32 : i32 to vector<8x128xi32>
    %6 = arith.cmpi slt, %2, %5 : vector<8x128xi32>
    %7 = arith.andi %4, %6 : vector<8x128xi1>
    %c0_3 = arith.constant 0 : index
    %c0_4 = arith.constant 0 : index
    %8 = vector.load %arg3[%c0_3, %c0_4] : memref<8x32xf32, #tpu.memory_space<vmem>>, vector<8x32xf32>
    %c0_5 = arith.constant 0 : index
    %c0_6 = arith.constant 0 : index
    %9 = vector.load %arg4[%c0_5, %c0_6] : memref<8x32xf32, #tpu.memory_space<vmem>>, vector<8x32xf32>
    %c0_i32 = arith.constant 0 : i32
    %10 = arith.index_cast %c0_i32 : i32 to index
    %c0_7 = arith.constant 0 : index
    %c0_8 = arith.constant 0 : index
    %11 = vector.load %arg1[%10, %c0_7, %c0_8] : memref<8x8x128xf32, #tpu.memory_space<vmem>>, vector<1x8x128xf32>
    %12 = vector.shape_cast %11 : vector<1x8x128xf32> to vector<8x128xf32>
    %cst = arith.constant dense<0.000000e+00> : vector<8x128xf32>
    %13 = tpu.matmul %8, %0, %cst {dimension_numbers = #tpu.dot_dimension_numbers<[1], [0], [0], [1], [0, 0, 1, 1], [], []>} : vector<8x32xf32>, vector<32x128xf32>, vector<8x128xf32> -> vector<8x128xf32>
    %14 = arith.addf %12, %13 : vector<8x128xf32>
    %15 = math.tanh %14 : vector<8x128xf32>
    %16 = arith.negf %14 : vector<8x128xf32>
    %17 = math.exp %16 : vector<8x128xf32>
    %cst_9 = arith.constant 1.000000e+00 : f32
    %18 = vector.broadcast %cst_9 : f32 to vector<8x128xf32>
    %19 = arith.addf %18, %17 : vector<8x128xf32>
    %20 = arith.divf %18, %19 : vector<8x128xf32>
    %21 = arith.select %7, %15, %20 : vector<8x128xi1>, vector<8x128xf32>
    %22 = vector.extract_strided_slice %21 {offsets = [0, 0], sizes = [8, 32], strides = [1, 1]} : vector<8x128xf32> to vector<8x32xf32>
    %23 = vector.extract_strided_slice %21 {offsets = [0, 32], sizes = [8, 32], strides = [1, 1]} : vector<8x128xf32> to vector<8x32xf32>
    %24 = vector.extract_strided_slice %21 {offsets = [0, 64], sizes = [8, 32], strides = [1, 1]} : vector<8x128xf32> to vector<8x32xf32>
    %25 = vector.extract_strided_slice %21 {offsets = [0, 96], sizes = [8, 32], strides = [1, 1]} : vector<8x128xf32> to vector<8x32xf32>
    %26 = arith.mulf %23, %9 : vector<8x32xf32>
    %27 = arith.mulf %22, %24 : vector<8x32xf32>
    %28 = arith.addf %26, %27 : vector<8x32xf32>
    %29 = math.tanh %28 : vector<8x32xf32>
    %30 = arith.mulf %25, %29 : vector<8x32xf32>
    %31 = vector.broadcast %c0_i32 : i32 to vector<8x1xi32>
    %32 = arith.cmpi slt, %31, %1 : vector<8x1xi32>
    %cst_10 = arith.constant 0.000000e+00 : f32
    %33 = vector.shape_cast %32 : vector<8x1xi1> to vector<8x1xi1>
    %34 = vector.broadcast %33 : vector<8x1xi1> to vector<8x32xi1>
    %35 = vector.broadcast %cst_10 : f32 to vector<8x32xf32>
    %36 = arith.select %34, %30, %35 : vector<8x32xi1>, vector<8x32xf32>
    %37 = arith.index_cast %c0_i32 : i32 to index
    %c0_11 = arith.constant 0 : index
    %c0_12 = arith.constant 0 : index
    %38 = vector.load %arg9[%37, %c0_11, %c0_12] : memref<8x8x32xf32, #tpu.memory_space<vmem>>, vector<1x8x32xf32>
    %39 = vector.shape_cast %38 : vector<1x8x32xf32> to vector<8x32xf32>
    %40 = vector.shape_cast %36 : vector<8x32xf32> to vector<1x8x32xf32>
    tpu.vector_store %arg9[%37, %c0_11, %c0_12], %40 {strides = array<i32>} : memref<8x8x32xf32, #tpu.memory_space<vmem>>, vector<1x8x32xf32>,
    %41 = vector.shape_cast %32 : vector<8x1xi1> to vector<8x1xi1>
    %42 = vector.broadcast %41 : vector<8x1xi1> to vector<8x32xi1>
    %43 = arith.select %42, %30, %8 : vector<8x32xi1>, vector<8x32xf32>
    %44 = vector.shape_cast %32 : vector<8x1xi1> to vector<8x1xi1>
    %45 = vector.broadcast %44 : vector<8x1xi1> to vector<8x32xi1>
    %46 = arith.select %45, %28, %9 : vector<8x32xi1>, vector<8x32xf32>
    %c1_i32 = arith.constant 1 : i32
    %47 = arith.index_cast %c1_i32 : i32 to index
    %c0_13 = arith.constant 0 : index
    %c0_14 = arith.constant 0 : index
    %48 = vector.load %arg1[%47, %c0_13, %c0_14] : memref<8x8x128xf32, #tpu.memory_space<vmem>>, vector<1x8x128xf32>
    %49 = vector.shape_cast %48 : vector<1x8x128xf32> to vector<8x128xf32>
    %cst_15 = arith.constant dense<0.000000e+00> : vector<8x128xf32>
    %50 = tpu.matmul %43, %0, %cst_15 {dimension_numbers = #tpu.dot_dimension_numbers<[1], [0], [0], [1], [0, 0, 1, 1], [], []>} : vector<8x32xf32>, vector<32x128xf32>, vector<8x128xf32> -> vector<8x128xf32>
    %51 = arith.addf %49, %50 : vector<8x128xf32>
    %52 = math.tanh %51 : vector<8x128xf32>
    %53 = arith.negf %51 : vector<8x128xf32>
    %54 = math.exp %53 : vector<8x128xf32>
    %cst_16 = arith.constant 1.000000e+00 : f32
    %55 = vector.broadcast %cst_16 : f32 to vector<8x128xf32>
    %56 = arith.addf %55, %54 : vector<8x128xf32>
    %57 = arith.divf %55, %56 : vector<8x128xf32>
    %58 = arith.select %7, %52, %57 : vector<8x128xi1>, vector<8x128xf32>
    %59 = vector.extract_strided_slice %58 {offsets = [0, 0], sizes = [8, 32], strides = [1, 1]} : vector<8x128xf32> to vector<8x32xf32>
    %60 = vector.extract_strided_slice %58 {offsets = [0, 32], sizes = [8, 32], strides = [1, 1]} : vector<8x128xf32> to vector<8x32xf32>
    %61 = vector.extract_strided_slice %58 {offsets = [0, 64], sizes = [8, 32], strides = [1, 1]} : vector<8x128xf32> to vector<8x32xf32>
    %62 = vector.extract_strided_slice %58 {offsets = [0, 96], sizes = [8, 32], strides = [1, 1]} : vector<8x128xf32> to vector<8x32xf32>
    %63 = arith.mulf %60, %46 : vector<8x32xf32>
    %64 = arith.mulf %59, %61 : vector<8x32xf32>
    %65 = arith.addf %63, %64 : vector<8x32xf32>
    %66 = math.tanh %65 : vector<8x32xf32>
    %67 = arith.mulf %62, %66 : vector<8x32xf32>
    %68 = vector.broadcast %c1_i32 : i32 to vector<8x1xi32>
    %69 = arith.cmpi slt, %68, %1 : vector<8x1xi32>
    %cst_17 = arith.constant 0.000000e+00 : f32
    %70 = vector.shape_cast %69 : vector<8x1xi1> to vector<8x1xi1>
    %71 = vector.broadcast %70 : vector<8x1xi1> to vector<8x32xi1>
    %72 = vector.broadcast %cst_17 : f32 to vector<8x32xf32>
    %73 = arith.select %71, %67, %72 : vector<8x32xi1>, vector<8x32xf32>
    %74 = arith.index_cast %c1_i32 : i32 to index
    %c0_18 = arith.constant 0 : index
    %c0_19 = arith.constant 0 : index
    %75 = vector.load %arg9[%74, %c0_18, %c0_19] : memref<8x8x32xf32, #tpu.memory_space<vmem>>, vector<1x8x32xf32>
    %76 = vector.shape_cast %75 : vector<1x8x32xf32> to vector<8x32xf32>
    %77 = vector.shape_cast %73 : vector<8x32xf32> to vector<1x8x32xf32>
    tpu.vector_store %arg9[%74, %c0_18, %c0_19], %77 {strides = array<i32>} : memref<8x8x32xf32, #tpu.memory_space<vmem>>, vector<1x8x32xf32>,
    %78 = vector.shape_cast %69 : vector<8x1xi1> to vector<8x1xi1>
    %79 = vector.broadcast %78 : vector<8x1xi1> to vector<8x32xi1>
    %80 = arith.select %79, %67, %43 : vector<8x32xi1>, vector<8x32xf32>
    %81 = vector.shape_cast %69 : vector<8x1xi1> to vector<8x1xi1>
    %82 = vector.broadcast %81 : vector<8x1xi1> to vector<8x32xi1>
    %83 = arith.select %82, %65, %46 : vector<8x32xi1>, vector<8x32xf32>
    %c2_i32 = arith.constant 2 : i32
    %84 = arith.index_cast %c2_i32 : i32 to index
    %c0_20 = arith.constant 0 : index
    %c0_21 = arith.constant 0 : index
    %85 = vector.load %arg1[%84, %c0_20, %c0_21] : memref<8x8x128xf32, #tpu.memory_space<vmem>>, vector<1x8x128xf32>
    %86 = vector.shape_cast %85 : vector<1x8x128xf32> to vector<8x128xf32>
    %cst_22 = arith.constant dense<0.000000e+00> : vector<8x128xf32>
    %87 = tpu.matmul %80, %0, %cst_22 {dimension_numbers = #tpu.dot_dimension_numbers<[1], [0], [0], [1], [0, 0, 1, 1], [], []>} : vector<8x32xf32>, vector<32x128xf32>, vector<8x128xf32> -> vector<8x128xf32>
    %88 = arith.addf %86, %87 : vector<8x128xf32>
    %89 = math.tanh %88 : vector<8x128xf32>
    %90 = arith.negf %88 : vector<8x128xf32>
    %91 = math.exp %90 : vector<8x128xf32>
    %cst_23 = arith.constant 1.000000e+00 : f32
    %92 = vector.broadcast %cst_23 : f32 to vector<8x128xf32>
    %93 = arith.addf %92, %91 : vector<8x128xf32>
    %94 = arith.divf %92, %93 : vector<8x128xf32>
    %95 = arith.select %7, %89, %94 : vector<8x128xi1>, vector<8x128xf32>
    %96 = vector.extract_strided_slice %95 {offsets = [0, 0], sizes = [8, 32], strides = [1, 1]} : vector<8x128xf32> to vector<8x32xf32>
    %97 = vector.extract_strided_slice %95 {offsets = [0, 32], sizes = [8, 32], strides = [1, 1]} : vector<8x128xf32> to vector<8x32xf32>
    %98 = vector.extract_strided_slice %95 {offsets = [0, 64], sizes = [8, 32], strides = [1, 1]} : vector<8x128xf32> to vector<8x32xf32>
    %99 = vector.extract_strided_slice %95 {offsets = [0, 96], sizes = [8, 32], strides = [1, 1]} : vector<8x128xf32> to vector<8x32xf32>
    %100 = arith.mulf %97, %83 : vector<8x32xf32>
    %101 = arith.mulf %96, %98 : vector<8x32xf32>
    %102 = arith.addf %100, %101 : vector<8x32xf32>
    %103 = math.tanh %102 : vector<8x32xf32>
    %104 = arith.mulf %99, %103 : vector<8x32xf32>
    %105 = vector.broadcast %c2_i32 : i32 to vector<8x1xi32>
    %106 = arith.cmpi slt, %105, %1 : vector<8x1xi32>
    %cst_24 = arith.constant 0.000000e+00 : f32
    %107 = vector.shape_cast %106 : vector<8x1xi1> to vector<8x1xi1>
    %108 = vector.broadcast %107 : vector<8x1xi1> to vector<8x32xi1>
    %109 = vector.broadcast %cst_24 : f32 to vector<8x32xf32>
    %110 = arith.select %108, %104, %109 : vector<8x32xi1>, vector<8x32xf32>
    %111 = arith.index_cast %c2_i32 : i32 to index
    %c0_25 = arith.constant 0 : index
    %c0_26 = arith.constant 0 : index
    %112 = vector.load %arg9[%111, %c0_25, %c0_26] : memref<8x8x32xf32, #tpu.memory_space<vmem>>, vector<1x8x32xf32>
    %113 = vector.shape_cast %112 : vector<1x8x32xf32> to vector<8x32xf32>
    %114 = vector.shape_cast %110 : vector<8x32xf32> to vector<1x8x32xf32>
    tpu.vector_store %arg9[%111, %c0_25, %c0_26], %114 {strides = array<i32>} : memref<8x8x32xf32, #tpu.memory_space<vmem>>, vector<1x8x32xf32>,
    %115 = vector.shape_cast %106 : vector<8x1xi1> to vector<8x1xi1>
    %116 = vector.broadcast %115 : vector<8x1xi1> to vector<8x32xi1>
    %117 = arith.select %116, %104, %80 : vector<8x32xi1>, vector<8x32xf32>
    %118 = vector.shape_cast %106 : vector<8x1xi1> to vector<8x1xi1>
    %119 = vector.broadcast %118 : vector<8x1xi1> to vector<8x32xi1>
    %120 = arith.select %119, %102, %83 : vector<8x32xi1>, vector<8x32xf32>
    %c3_i32 = arith.constant 3 : i32
    %121 = arith.index_cast %c3_i32 : i32 to index
    %c0_27 = arith.constant 0 : index
    %c0_28 = arith.constant 0 : index
    %122 = vector.load %arg1[%121, %c0_27, %c0_28] : memref<8x8x128xf32, #tpu.memory_space<vmem>>, vector<1x8x128xf32>
    %123 = vector.shape_cast %122 : vector<1x8x128xf32> to vector<8x128xf32>
    %cst_29 = arith.constant dense<0.000000e+00> : vector<8x128xf32>
    %124 = tpu.matmul %117, %0, %cst_29 {dimension_numbers = #tpu.dot_dimension_numbers<[1], [0], [0], [1], [0, 0, 1, 1], [], []>} : vector<8x32xf32>, vector<32x128xf32>, vector<8x128xf32> -> vector<8x128xf32>
    %125 = arith.addf %123, %124 : vector<8x128xf32>
    %126 = math.tanh %125 : vector<8x128xf32>
    %127 = arith.negf %125 : vector<8x128xf32>
    %128 = math.exp %127 : vector<8x128xf32>
    %cst_30 = arith.constant 1.000000e+00 : f32
    %129 = vector.broadcast %cst_30 : f32 to vector<8x128xf32>
    %130 = arith.addf %129, %128 : vector<8x128xf32>
    %131 = arith.divf %129, %130 : vector<8x128xf32>
    %132 = arith.select %7, %126, %131 : vector<8x128xi1>, vector<8x128xf32>
    %133 = vector.extract_strided_slice %132 {offsets = [0, 0], sizes = [8, 32], strides = [1, 1]} : vector<8x128xf32> to vector<8x32xf32>
    %134 = vector.extract_strided_slice %132 {offsets = [0, 32], sizes = [8, 32], strides = [1, 1]} : vector<8x128xf32> to vector<8x32xf32>
    %135 = vector.extract_strided_slice %132 {offsets = [0, 64], sizes = [8, 32], strides = [1, 1]} : vector<8x128xf32> to vector<8x32xf32>
    %136 = vector.extract_strided_slice %132 {offsets = [0, 96], sizes = [8, 32], strides = [1, 1]} : vector<8x128xf32> to vector<8x32xf32>
    %137 = arith.mulf %134, %120 : vector<8x32xf32>
    %138 = arith.mulf %133, %135 : vector<8x32xf32>
    %139 = arith.addf %137, %138 : vector<8x32xf32>
    %140 = math.tanh %139 : vector<8x32xf32>
    %141 = arith.mulf %136, %140 : vector<8x32xf32>
    %142 = vector.broadcast %c3_i32 : i32 to vector<8x1xi32>
    %143 = arith.cmpi slt, %142, %1 : vector<8x1xi32>
    %cst_31 = arith.constant 0.000000e+00 : f32
    %144 = vector.shape_cast %143 : vector<8x1xi1> to vector<8x1xi1>
    %145 = vector.broadcast %144 : vector<8x1xi1> to vector<8x32xi1>
    %146 = vector.broadcast %cst_31 : f32 to vector<8x32xf32>
    %147 = arith.select %145, %141, %146 : vector<8x32xi1>, vector<8x32xf32>
    %148 = arith.index_cast %c3_i32 : i32 to index
    %c0_32 = arith.constant 0 : index
    %c0_33 = arith.constant 0 : index
    %149 = vector.load %arg9[%148, %c0_32, %c0_33] : memref<8x8x32xf32, #tpu.memory_space<vmem>>, vector<1x8x32xf32>
    %150 = vector.shape_cast %149 : vector<1x8x32xf32> to vector<8x32xf32>
    %151 = vector.shape_cast %147 : vector<8x32xf32> to vector<1x8x32xf32>
    tpu.vector_store %arg9[%148, %c0_32, %c0_33], %151 {strides = array<i32>} : memref<8x8x32xf32, #tpu.memory_space<vmem>>, vector<1x8x32xf32>,
    %152 = vector.shape_cast %143 : vector<8x1xi1> to vector<8x1xi1>
    %153 = vector.broadcast %152 : vector<8x1xi1> to vector<8x32xi1>
    %154 = arith.select %153, %141, %117 : vector<8x32xi1>, vector<8x32xf32>
    %155 = vector.shape_cast %143 : vector<8x1xi1> to vector<8x1xi1>
    %156 = vector.broadcast %155 : vector<8x1xi1> to vector<8x32xi1>
    %157 = arith.select %156, %139, %120 : vector<8x32xi1>, vector<8x32xf32>
    %c4_i32 = arith.constant 4 : i32
    %158 = arith.index_cast %c4_i32 : i32 to index
    %c0_34 = arith.constant 0 : index
    %c0_35 = arith.constant 0 : index
    %159 = vector.load %arg1[%158, %c0_34, %c0_35] : memref<8x8x128xf32, #tpu.memory_space<vmem>>, vector<1x8x128xf32>
    %160 = vector.shape_cast %159 : vector<1x8x128xf32> to vector<8x128xf32>
    %cst_36 = arith.constant dense<0.000000e+00> : vector<8x128xf32>
    %161 = tpu.matmul %154, %0, %cst_36 {dimension_numbers = #tpu.dot_dimension_numbers<[1], [0], [0], [1], [0, 0, 1, 1], [], []>} : vector<8x32xf32>, vector<32x128xf32>, vector<8x128xf32> -> vector<8x128xf32>
    %162 = arith.addf %160, %161 : vector<8x128xf32>
    %163 = math.tanh %162 : vector<8x128xf32>
    %164 = arith.negf %162 : vector<8x128xf32>
    %165 = math.exp %164 : vector<8x128xf32>
    %cst_37 = arith.constant 1.000000e+00 : f32
    %166 = vector.broadcast %cst_37 : f32 to vector<8x128xf32>
    %167 = arith.addf %166, %165 : vector<8x128xf32>
    %168 = arith.divf %166, %167 : vector<8x128xf32>
    %169 = arith.select %7, %163, %168 : vector<8x128xi1>, vector<8x128xf32>
    %170 = vector.extract_strided_slice %169 {offsets = [0, 0], sizes = [8, 32], strides = [1, 1]} : vector<8x128xf32> to vector<8x32xf32>
    %171 = vector.extract_strided_slice %169 {offsets = [0, 32], sizes = [8, 32], strides = [1, 1]} : vector<8x128xf32> to vector<8x32xf32>
    %172 = vector.extract_strided_slice %169 {offsets = [0, 64], sizes = [8, 32], strides = [1, 1]} : vector<8x128xf32> to vector<8x32xf32>
    %173 = vector.extract_strided_slice %169 {offsets = [0, 96], sizes = [8, 32], strides = [1, 1]} : vector<8x128xf32> to vector<8x32xf32>
    %174 = arith.mulf %171, %157 : vector<8x32xf32>
    %175 = arith.mulf %170, %172 : vector<8x32xf32>
    %176 = arith.addf %174, %175 : vector<8x32xf32>
    %177 = math.tanh %176 : vector<8x32xf32>
    %178 = arith.mulf %173, %177 : vector<8x32xf32>
    %179 = vector.broadcast %c4_i32 : i32 to vector<8x1xi32>
    %180 = arith.cmpi slt, %179, %1 : vector<8x1xi32>
    %cst_38 = arith.constant 0.000000e+00 : f32
    %181 = vector.shape_cast %180 : vector<8x1xi1> to vector<8x1xi1>
    %182 = vector.broadcast %181 : vector<8x1xi1> to vector<8x32xi1>
    %183 = vector.broadcast %cst_38 : f32 to vector<8x32xf32>
    %184 = arith.select %182, %178, %183 : vector<8x32xi1>, vector<8x32xf32>
    %185 = arith.index_cast %c4_i32 : i32 to index
    %c0_39 = arith.constant 0 : index
    %c0_40 = arith.constant 0 : index
    %186 = vector.load %arg9[%185, %c0_39, %c0_40] : memref<8x8x32xf32, #tpu.memory_space<vmem>>, vector<1x8x32xf32>
    %187 = vector.shape_cast %186 : vector<1x8x32xf32> to vector<8x32xf32>
    %188 = vector.shape_cast %184 : vector<8x32xf32> to vector<1x8x32xf32>
    tpu.vector_store %arg9[%185, %c0_39, %c0_40], %188 {strides = array<i32>} : memref<8x8x32xf32, #tpu.memory_space<vmem>>, vector<1x8x32xf32>,
    %189 = vector.shape_cast %180 : vector<8x1xi1> to vector<8x1xi1>
    %190 = vector.broadcast %189 : vector<8x1xi1> to vector<8x32xi1>
    %191 = arith.select %190, %178, %154 : vector<8x32xi1>, vector<8x32xf32>
    %192 = vector.shape_cast %180 : vector<8x1xi1> to vector<8x1xi1>
    %193 = vector.broadcast %192 : vector<8x1xi1> to vector<8x32xi1>
    %194 = arith.select %193, %176, %157 : vector<8x32xi1>, vector<8x32xf32>
    %c5_i32 = arith.constant 5 : i32
    %195 = arith.index_cast %c5_i32 : i32 to index
    %c0_41 = arith.constant 0 : index
    %c0_42 = arith.constant 0 : index
    %196 = vector.load %arg1[%195, %c0_41, %c0_42] : memref<8x8x128xf32, #tpu.memory_space<vmem>>, vector<1x8x128xf32>
    %197 = vector.shape_cast %196 : vector<1x8x128xf32> to vector<8x128xf32>
    %cst_43 = arith.constant dense<0.000000e+00> : vector<8x128xf32>
    %198 = tpu.matmul %191, %0, %cst_43 {dimension_numbers = #tpu.dot_dimension_numbers<[1], [0], [0], [1], [0, 0, 1, 1], [], []>} : vector<8x32xf32>, vector<32x128xf32>, vector<8x128xf32> -> vector<8x128xf32>
    %199 = arith.addf %197, %198 : vector<8x128xf32>
    %200 = math.tanh %199 : vector<8x128xf32>
    %201 = arith.negf %199 : vector<8x128xf32>
    %202 = math.exp %201 : vector<8x128xf32>
    %cst_44 = arith.constant 1.000000e+00 : f32
    %203 = vector.broadcast %cst_44 : f32 to vector<8x128xf32>
    %204 = arith.addf %203, %202 : vector<8x128xf32>
    %205 = arith.divf %203, %204 : vector<8x128xf32>
    %206 = arith.select %7, %200, %205 : vector<8x128xi1>, vector<8x128xf32>
    %207 = vector.extract_strided_slice %206 {offsets = [0, 0], sizes = [8, 32], strides = [1, 1]} : vector<8x128xf32> to vector<8x32xf32>
    %208 = vector.extract_strided_slice %206 {offsets = [0, 32], sizes = [8, 32], strides = [1, 1]} : vector<8x128xf32> to vector<8x32xf32>
    %209 = vector.extract_strided_slice %206 {offsets = [0, 64], sizes = [8, 32], strides = [1, 1]} : vector<8x128xf32> to vector<8x32xf32>
    %210 = vector.extract_strided_slice %206 {offsets = [0, 96], sizes = [8, 32], strides = [1, 1]} : vector<8x128xf32> to vector<8x32xf32>
    %211 = arith.mulf %208, %194 : vector<8x32xf32>
    %212 = arith.mulf %207, %209 : vector<8x32xf32>
    %213 = arith.addf %211, %212 : vector<8x32xf32>
    %214 = math.tanh %213 : vector<8x32xf32>
    %215 = arith.mulf %210, %214 : vector<8x32xf32>
    %216 = vector.broadcast %c5_i32 : i32 to vector<8x1xi32>
    %217 = arith.cmpi slt, %216, %1 : vector<8x1xi32>
    %cst_45 = arith.constant 0.000000e+00 : f32
    %218 = vector.shape_cast %217 : vector<8x1xi1> to vector<8x1xi1>
    %219 = vector.broadcast %218 : vector<8x1xi1> to vector<8x32xi1>
    %220 = vector.broadcast %cst_45 : f32 to vector<8x32xf32>
    %221 = arith.select %219, %215, %220 : vector<8x32xi1>, vector<8x32xf32>
    %222 = arith.index_cast %c5_i32 : i32 to index
    %c0_46 = arith.constant 0 : index
    %c0_47 = arith.constant 0 : index
    %223 = vector.load %arg9[%222, %c0_46, %c0_47] : memref<8x8x32xf32, #tpu.memory_space<vmem>>, vector<1x8x32xf32>
    %224 = vector.shape_cast %223 : vector<1x8x32xf32> to vector<8x32xf32>
    %225 = vector.shape_cast %221 : vector<8x32xf32> to vector<1x8x32xf32>
    tpu.vector_store %arg9[%222, %c0_46, %c0_47], %225 {strides = array<i32>} : memref<8x8x32xf32, #tpu.memory_space<vmem>>, vector<1x8x32xf32>,
    %226 = vector.shape_cast %217 : vector<8x1xi1> to vector<8x1xi1>
    %227 = vector.broadcast %226 : vector<8x1xi1> to vector<8x32xi1>
    %228 = arith.select %227, %215, %191 : vector<8x32xi1>, vector<8x32xf32>
    %229 = vector.shape_cast %217 : vector<8x1xi1> to vector<8x1xi1>
    %230 = vector.broadcast %229 : vector<8x1xi1> to vector<8x32xi1>
    %231 = arith.select %230, %213, %194 : vector<8x32xi1>, vector<8x32xf32>
    %c6_i32 = arith.constant 6 : i32
    %232 = arith.index_cast %c6_i32 : i32 to index
    %c0_48 = arith.constant 0 : index
    %c0_49 = arith.constant 0 : index
    %233 = vector.load %arg1[%232, %c0_48, %c0_49] : memref<8x8x128xf32, #tpu.memory_space<vmem>>, vector<1x8x128xf32>
    %234 = vector.shape_cast %233 : vector<1x8x128xf32> to vector<8x128xf32>
    %cst_50 = arith.constant dense<0.000000e+00> : vector<8x128xf32>
    %235 = tpu.matmul %228, %0, %cst_50 {dimension_numbers = #tpu.dot_dimension_numbers<[1], [0], [0], [1], [0, 0, 1, 1], [], []>} : vector<8x32xf32>, vector<32x128xf32>, vector<8x128xf32> -> vector<8x128xf32>
    %236 = arith.addf %234, %235 : vector<8x128xf32>
    %237 = math.tanh %236 : vector<8x128xf32>
    %238 = arith.negf %236 : vector<8x128xf32>
    %239 = math.exp %238 : vector<8x128xf32>
    %cst_51 = arith.constant 1.000000e+00 : f32
    %240 = vector.broadcast %cst_51 : f32 to vector<8x128xf32>
    %241 = arith.addf %240, %239 : vector<8x128xf32>
    %242 = arith.divf %240, %241 : vector<8x128xf32>
    %243 = arith.select %7, %237, %242 : vector<8x128xi1>, vector<8x128xf32>
    %244 = vector.extract_strided_slice %243 {offsets = [0, 0], sizes = [8, 32], strides = [1, 1]} : vector<8x128xf32> to vector<8x32xf32>
    %245 = vector.extract_strided_slice %243 {offsets = [0, 32], sizes = [8, 32], strides = [1, 1]} : vector<8x128xf32> to vector<8x32xf32>
    %246 = vector.extract_strided_slice %243 {offsets = [0, 64], sizes = [8, 32], strides = [1, 1]} : vector<8x128xf32> to vector<8x32xf32>
    %247 = vector.extract_strided_slice %243 {offsets = [0, 96], sizes = [8, 32], strides = [1, 1]} : vector<8x128xf32> to vector<8x32xf32>
    %248 = arith.mulf %245, %231 : vector<8x32xf32>
    %249 = arith.mulf %244, %246 : vector<8x32xf32>
    %250 = arith.addf %248, %249 : vector<8x32xf32>
    %251 = math.tanh %250 : vector<8x32xf32>
    %252 = arith.mulf %247, %251 : vector<8x32xf32>
    %253 = vector.broadcast %c6_i32 : i32 to vector<8x1xi32>
    %254 = arith.cmpi slt, %253, %1 : vector<8x1xi32>
    %cst_52 = arith.constant 0.000000e+00 : f32
    %255 = vector.shape_cast %254 : vector<8x1xi1> to vector<8x1xi1>
    %256 = vector.broadcast %255 : vector<8x1xi1> to vector<8x32xi1>
    %257 = vector.broadcast %cst_52 : f32 to vector<8x32xf32>
    %258 = arith.select %256, %252, %257 : vector<8x32xi1>, vector<8x32xf32>
    %259 = arith.index_cast %c6_i32 : i32 to index
    %c0_53 = arith.constant 0 : index
    %c0_54 = arith.constant 0 : index
    %260 = vector.load %arg9[%259, %c0_53, %c0_54] : memref<8x8x32xf32, #tpu.memory_space<vmem>>, vector<1x8x32xf32>
    %261 = vector.shape_cast %260 : vector<1x8x32xf32> to vector<8x32xf32>
    %262 = vector.shape_cast %258 : vector<8x32xf32> to vector<1x8x32xf32>
    tpu.vector_store %arg9[%259, %c0_53, %c0_54], %262 {strides = array<i32>} : memref<8x8x32xf32, #tpu.memory_space<vmem>>, vector<1x8x32xf32>,
    %263 = vector.shape_cast %254 : vector<8x1xi1> to vector<8x1xi1>
    %264 = vector.broadcast %263 : vector<8x1xi1> to vector<8x32xi1>
    %265 = arith.select %264, %252, %228 : vector<8x32xi1>, vector<8x32xf32>
    %266 = vector.shape_cast %254 : vector<8x1xi1> to vector<8x1xi1>
    %267 = vector.broadcast %266 : vector<8x1xi1> to vector<8x32xi1>
    %268 = arith.select %267, %250, %231 : vector<8x32xi1>, vector<8x32xf32>
    %c7_i32 = arith.constant 7 : i32
    %269 = arith.index_cast %c7_i32 : i32 to index
    %c0_55 = arith.constant 0 : index
    %c0_56 = arith.constant 0 : index
    %270 = vector.load %arg1[%269, %c0_55, %c0_56] : memref<8x8x128xf32, #tpu.memory_space<vmem>>, vector<1x8x128xf32>
    %271 = vector.shape_cast %270 : vector<1x8x128xf32> to vector<8x128xf32>
    %cst_57 = arith.constant dense<0.000000e+00> : vector<8x128xf32>
    %272 = tpu.matmul %265, %0, %cst_57 {dimension_numbers = #tpu.dot_dimension_numbers<[1], [0], [0], [1], [0, 0, 1, 1], [], []>} : vector<8x32xf32>, vector<32x128xf32>, vector<8x128xf32> -> vector<8x128xf32>
    %273 = arith.addf %271, %272 : vector<8x128xf32>
    %274 = math.tanh %273 : vector<8x128xf32>
    %275 = arith.negf %273 : vector<8x128xf32>
    %276 = math.exp %275 : vector<8x128xf32>
    %cst_58 = arith.constant 1.000000e+00 : f32
    %277 = vector.broadcast %cst_58 : f32 to vector<8x128xf32>
    %278 = arith.addf %277, %276 : vector<8x128xf32>
    %279 = arith.divf %277, %278 : vector<8x128xf32>
    %280 = arith.select %7, %274, %279 : vector<8x128xi1>, vector<8x128xf32>
    %281 = vector.extract_strided_slice %280 {offsets = [0, 0], sizes = [8, 32], strides = [1, 1]} : vector<8x128xf32> to vector<8x32xf32>
    %282 = vector.extract_strided_slice %280 {offsets = [0, 32], sizes = [8, 32], strides = [1, 1]} : vector<8x128xf32> to vector<8x32xf32>
    %283 = vector.extract_strided_slice %280 {offsets = [0, 64], sizes = [8, 32], strides = [1, 1]} : vector<8x128xf32> to vector<8x32xf32>
    %284 = vector.extract_strided_slice %280 {offsets = [0, 96], sizes = [8, 32], strides = [1, 1]} : vector<8x128xf32> to vector<8x32xf32>
    %285 = arith.mulf %282, %268 : vector<8x32xf32>
    %286 = arith.mulf %281, %283 : vector<8x32xf32>
    %287 = arith.addf %285, %286 : vector<8x32xf32>
    %288 = math.tanh %287 : vector<8x32xf32>
    %289 = arith.mulf %284, %288 : vector<8x32xf32>
    %290 = vector.broadcast %c7_i32 : i32 to vector<8x1xi32>
    %291 = arith.cmpi slt, %290, %1 : vector<8x1xi32>
    %cst_59 = arith.constant 0.000000e+00 : f32
    %292 = vector.shape_cast %291 : vector<8x1xi1> to vector<8x1xi1>
    %293 = vector.broadcast %292 : vector<8x1xi1> to vector<8x32xi1>
    %294 = vector.broadcast %cst_59 : f32 to vector<8x32xf32>
    %295 = arith.select %293, %289, %294 : vector<8x32xi1>, vector<8x32xf32>
    %296 = arith.index_cast %c7_i32 : i32 to index
    %c0_60 = arith.constant 0 : index
    %c0_61 = arith.constant 0 : index
    %297 = vector.load %arg9[%296, %c0_60, %c0_61] : memref<8x8x32xf32, #tpu.memory_space<vmem>>, vector<1x8x32xf32>
    %298 = vector.shape_cast %297 : vector<1x8x32xf32> to vector<8x32xf32>
    %299 = vector.shape_cast %295 : vector<8x32xf32> to vector<1x8x32xf32>
    tpu.vector_store %arg9[%296, %c0_60, %c0_61], %299 {strides = array<i32>} : memref<8x8x32xf32, #tpu.memory_space<vmem>>, vector<1x8x32xf32>,
    %300 = vector.shape_cast %291 : vector<8x1xi1> to vector<8x1xi1>
    %301 = vector.broadcast %300 : vector<8x1xi1> to vector<8x32xi1>
    %302 = arith.select %301, %289, %265 : vector<8x32xi1>, vector<8x32xf32>
    %303 = vector.shape_cast %291 : vector<8x1xi1> to vector<8x1xi1>
    %304 = vector.broadcast %303 : vector<8x1xi1> to vector<8x32xi1>
    %305 = arith.select %304, %287, %268 : vector<8x32xi1>, vector<8x32xf32>
    %c8_i32 = arith.constant 8 : i32
    %c0_62 = arith.constant 0 : index
    %c0_63 = arith.constant 0 : index
    %c0_64 = arith.constant 0 : index
    %306 = vector.load %arg9[%c0_62, %c0_63, %c0_64] : memref<8x8x32xf32, #tpu.memory_space<vmem>>, vector<8x8x32xf32>
    %307 = vector.shape_cast %306 : vector<8x8x32xf32> to vector<64x32xf32>
    %c0_65 = arith.constant 0 : index
    %c0_66 = arith.constant 0 : index
    %308 = vector.load %arg6[%c0_65, %c0_66] : memref<32x16xf32, #tpu.memory_space<vmem>>, vector<32x16xf32>
    %cst_67 = arith.constant dense<0.000000e+00> : vector<64x16xf32>
    %309 = tpu.matmul %307, %308, %cst_67 {dimension_numbers = #tpu.dot_dimension_numbers<[1], [0], [0], [1], [0, 0, 1, 1], [], []>} : vector<64x32xf32>, vector<32x16xf32>, vector<64x16xf32> -> vector<64x16xf32>
    %c0_68 = arith.constant 0 : index
    %c0_69 = arith.constant 0 : index
    %310 = vector.load %arg7[%c0_68, %c0_69] : memref<1x16xf32, #tpu.memory_space<vmem>>, vector<1x16xf32>
    %311 = vector.broadcast %310 : vector<1x16xf32> to vector<64x16xf32>
    %312 = arith.addf %309, %311 : vector<64x16xf32>
    %313 = math.tanh %312 : vector<64x16xf32>
    %314 = vector.shape_cast %313 : vector<64x16xf32> to vector<8x8x16xf32>
    %c0_70 = arith.constant 0 : index
    %c0_71 = arith.constant 0 : index
    %c0_72 = arith.constant 0 : index
    %315 = vector.load %arg8[%c0_70, %c0_71, %c0_72] : memref<8x8x16xf32, #tpu.memory_space<vmem>>, vector<8x8x16xf32>
    tpu.vector_store %arg8[%c0_70, %c0_71, %c0_72], %314 {strides = array<i32>} : memref<8x8x16xf32, #tpu.memory_space<vmem>>, vector<8x8x16xf32>,
    return
  }
  func.func @transform_0(%arg0: i32) -> (i32, i32, i32) {
    %c0_i32 = arith.constant 0 : i32
    %c0_i32_0 = arith.constant 0 : i32
    %c0_i32_1 = arith.constant 0 : i32
    return %c0_i32, %arg0, %c0_i32_0 : i32, i32, i32
  }
  func.func @transform_1(%arg0: i32) -> (i32, i32) {
    %c0_i32 = arith.constant 0 : i32
    %c0_i32_0 = arith.constant 0 : i32
    return %arg0, %c0_i32 : i32, i32
  }
  func.func @transform_2(%arg0: i32) -> (i32, i32) {
    %c0_i32 = arith.constant 0 : i32
    %c0_i32_0 = arith.constant 0 : i32
    return %arg0, %c0_i32 : i32, i32
  }
  func.func @transform_3(%arg0: i32) -> (i32, i32) {
    %c0_i32 = arith.constant 0 : i32
    %c0_i32_0 = arith.constant 0 : i32
    return %arg0, %c0_i32 : i32, i32
  }
  func.func @transform_4(%arg0: i32) -> (i32, i32) {
    %c0_i32 = arith.constant 0 : i32
    %c0_i32_0 = arith.constant 0 : i32
    %c0_i32_1 = arith.constant 0 : i32
    return %c0_i32, %c0_i32_0 : i32, i32
  }
  func.func @transform_5(%arg0: i32) -> (i32, i32) {
    %c0_i32 = arith.constant 0 : i32
    %c0_i32_0 = arith.constant 0 : i32
    %c0_i32_1 = arith.constant 0 : i32
    return %c0_i32, %c0_i32_0 : i32, i32
  }
  func.func @transform_6(%arg0: i32) -> (i32, i32) {
    %c0_i32 = arith.constant 0 : i32
    %c0_i32_0 = arith.constant 0 : i32
    %c0_i32_1 = arith.constant 0 : i32
    return %c0_i32, %c0_i32_0 : i32, i32
  }
  func.func @transform_7(%arg0: i32) -> (i32, i32, i32) {
    %c0_i32 = arith.constant 0 : i32
    %c0_i32_0 = arith.constant 0 : i32
    %c0_i32_1 = arith.constant 0 : i32
    return %c0_i32, %arg0, %c0_i32_0 : i32, i32, i32
  }
  func.func @transform_8(%arg0: i32) -> (i32, i32, i32) {
    %c0_i32 = arith.constant 0 : i32
    %c0_i32_0 = arith.constant 0 : i32
    %c0_i32_1 = arith.constant 0 : i32
    return %c0_i32, %arg0, %c0_i32_0 : i32, i32, i32
  }
}

</mosaic_0001>

<bundles_post_ra>
// kernel: tpu_custom_call.1
= control target key start
LH: loop header
LB: loop body
LE: loop exit
PB: predicated region body
PF: predicated region fallthrough
CT: control target
= control target key end

     0   :  { %14 = vsyncpa [#allocation3], 0  ;;  %s1935_s0 = inlined_call_operand.hbm [shape: f32[8,8,128], index: 0, kind: input, shape index: {}]   ;;  %s1936_s1 = inlined_call_operand.vmem [shape: s32[8,1], index: 1, kind: input, shape index: {}]   ;;  %s1937_s2 = inlined_call_operand.vmem [shape: f32[8,32], index: 2, kind: input, shape index: {}]   ;;  %s1938_s3 = inlined_call_operand.vmem [shape: f32[8,32], index: 3, kind: input, shape index: {}]   ;;  %s1939_s4 = inlined_call_operand.vmem [shape: f32[32,128], index: 4, kind: input, shape index: {}]   ;;  %s1940_s5 = inlined_call_operand.vmem [shape: f32[32,16], index: 5, kind: input, shape index: {}]   ;;  %s1941_s6 = inlined_call_operand.vmem [shape: f32[1,16], index: 6, kind: input, shape index: {}]   ;;  %s1942_s7 = inlined_call_operand.hbm [shape: f32[8,8,16], index: 7, kind: output, shape index: {0}]   ;;  %s1943_s8 = inlined_call_operand.hbm [shape: f32[8,8,32], index: 8, kind: output, shape index: {1}]  }
   0x1   :  { %15 = vsyncpa [#allocation4], 0 }
   0x2   :  { %16 = vsyncpa [#allocation7], 0  ;;  %s1544_s27 = smov [#allocation2]  }
   0x3   :  { %s22_s28 = sshll.u32 %s1544_s27, 4  ;;  %s23_s28 = int_to_ptr.vmem [resolvable:$true] %s22_s28 }
   0x4   :  { %s1486_s29 = scalar_lea.vmem %s23_s28, 1024  ;;  %p1491_p1 = scmp.lt.s32.totalorder %s23_s28, %s23_s28 }
   0x5   :  { %p1487_p0 = scmp.ne.s32.totalorder %s23_s28, %s1486_s29  ;;  %p1492_p2 = scmp.lt.s32.totalorder %s1486_s29, %s1486_s29 }
   0x7   :  { %p1493_p3 = por %p1492_p2, %p1491_p1 }
   0x9   :  { %p1494_p4 = pnand %p1493_p3, %p1487_p0 }
   0xb   :  { %1497 = shalt.err (!%p1494_p4)
}
   0xc   :  { %s1545_s30 = smov 128   ;;  %s1546_s9 = smov 8  }
   0xd   :  { %28 = dma.hbm_to_vmem [thread:$0]  %s1935_s0, 1024, %s23_s28, [#allocation3], %s1545_s30, %s1545_s30, %s1546_s9  }
   0xe   :  { %1538 = dma.done.wait [#allocation3], 1024  }
   0xf   :  { %1539 = vsyncadd [#allocation3], 4294966272  ;;  %v1547_v0 = vmov 0.0   ;;  %vm1548_vm0 = vmmov 0   ;;  %v1615_v1 = vld [vmem:[%s1939_s4 + $0x18] sm:$0xff]  ;;  %v1620_v2 = vld [vmem:[%s1939_s4 + $0x10] sm:$0xff]  ;;  %v49_v13 = vlaneseq }
  0x10   :  { %1277 = vmatprep.subr.mxu1 %v1547_v0  ;;  %1285 = vmatprep.mubr.msk.f32.mxu1 %vm1548_vm0, %v1547_v0  ;;  %v1628_v3 = vld [vmem:[%s1939_s4 + $0x8] sm:$0xff]  ;;  %v1637_v4 = vld [vmem:[%s1939_s4] sm:$0xff]  ;;  %vm57_vm1 = vcmask 261120   ;;  %v1549_v15 = vmov 0   ;;  %s1551_s22 = smov 32   ;;  %s1552_s25 = smov 96  }
  0x11   :  { %1299 = vmatprep.subr.mxu0 %v1547_v0  ;;  %1307 = vmatprep.mubr.msk.f32.mxu0 %vm1548_vm0, %v1547_v0  ;;  %v54_v5 = vld [vmem:[%s1937_s2] sm:$0xff]  ;;  %v50_v14 = vand.u32 127, %v49_v13  ;;  %s1550_s2 = smov 64   ;;  %v179_v36 = vld [vmem:[#allocation2 + $0x8] sm:$0xff]  ;;  %v297_v59 = vld [vmem:[#allocation2 + $0x10] sm:$0xff]  ;;  %s1553_s13 = smov [#allocation6]  }
  0x12   :  { %1278 = vmatpush3.msra.mxu1 %v1615_v1  ;;  %1300 = vmatpush3.msra.mxu0 %v1615_v1  ;;  %v56_v6 = vld [vmem:[#allocation2] sm:$0xff]  ;;  %s1184_s0 = sshll.u32 %s1553_s13, 4  ;;  %s1185_s0 = int_to_ptr.vmem [resolvable:$true] %s1184_s0 }
  0x13   :  { %1279 = vmatprep.subr.mxu1 %v1547_v0  ;;  %1301 = vmatprep.subr.mxu0 %v1547_v0  ;;  %vm51_vm2 = vcmp.ge.s32.totalorder %v50_v14, 64  ;;  %vm52_vm3 = vcmp.lt.s32.totalorder %v50_v14, 96  ;;  %v55_v20 = vld [vmem:[%s1938_s3] sm:$0xff]  ;;  %s1498_s14 = scalar_lea.vmem %s1185_s0, 1024  ;;  %p1503_p6 = scmp.lt.s32.totalorder %s1185_s0, %s1185_s0 }
  0x14   :  { %1280 = vmatpush3.msra.mxu1 %v1620_v2  ;;  %1302 = vmatpush3.msra.mxu0 %v1620_v2  ;;  %vm1664_vm4 = vmand %vm51_vm2, %vm52_vm3  ;;  %v1678_v21 = vld [vmem:[%s1936_s1] sm:$0xff]  ;;  %p1499_p5 = scmp.ne.s32.totalorder %s1185_s0, %s1498_s14  ;;  %p1504_p7 = scmp.lt.s32.totalorder %s1498_s14, %s1498_s14 }
  0x15   :  { %1281 = vmatprep.subr.mxu1 %v1547_v0  ;;  %1303 = vmatprep.subr.mxu0 %v1547_v0  ;;  %vm161_vm5 = vcmp.gt.s32.totalorder %v1678_v21, 0  ;;  %vm281_vm7 = vcmp.gt.s32.totalorder %v1678_v21, 1  ;;  %vm399_vm9 = vcmp.gt.s32.totalorder %v1678_v21, 2  ;;  %vm517_vm11 = vcmp.gt.s32.totalorder %v1678_v21, 3 }
  0x16   :  { %1282 = vmatpush3.msra.mxu1 %v1628_v3  ;;  %1304 = vmatpush3.msra.mxu0 %v1628_v3  ;;  %v162_v24 = vsel %vm161_vm5, 1, %v1549_v15  ;;  %v282_v46 = vsel %vm281_vm7, 1, %v1549_v15  ;;  %vm635_vm13 = vcmp.gt.s32.totalorder %v1678_v21, 4  ;;  %vm753_vm15 = vcmp.gt.s32.totalorder %v1678_v21, 5  ;;  %p1505_p8 = por %p1504_p7, %p1503_p6 }
  0x17   :  { %1283 = vmatprep.subr.mxu1 %v1547_v0  ;;  %1305 = vmatprep.subr.mxu0 %v1547_v0  ;;  %vm871_vm2 = vcmp.gt.s32.totalorder %v1678_v21, 6  ;;  %vm989_vm5 = vcmp.gt.s32.totalorder %v1678_v21, 7 }
  0x18   :  { %1284 = vmatpush3.msra.mxu1 %v1637_v4  ;;  %1306 = vmatpush3.msra.mxu0 %v1637_v4  ;;  %p1506_p9 = pnand %p1505_p8, %p1499_p5 }
  0x19   :  { %1286 = vmatmul.mubr.msk.f32.vlgmr.msra.gmra.mxu1 %vm57_vm1, %v54_v5  ;;  %1288 = vmatprep.subr.mxu1 %v1547_v0 }
  0x1a   :  { %1289 = vmatpush3.msra.mxu1 %v1615_v1  ;;  %1296 = vmatprep.mubr.msk.f32.mxu1 %vm1548_vm0, %v1547_v0 }
  0x1b   :  { %1290 = vmatprep.subr.mxu1 %v1547_v0  ;;  %1321 = vmatprep.subr.mxu0 %v1547_v0 }
  0x1c   :  { %1291 = vmatpush3.msra.mxu1 %v1620_v2  ;;  %1396 = vset.pattern.permute.xlu1 %v1549_v15 }
  0x1d   :  { %1292 = vmatprep.subr.mxu1 %v1547_v0  ;;  %1397 = vset.pattern.permute.xlu0 %v1549_v15 }
  0x1e   :  { %1293 = vmatpush3.msra.mxu1 %v1628_v3 }
  0x1f   :  { %1294 = vmatprep.subr.mxu1 %v1547_v0 }
  0x20   :  { %1295 = vmatpush3.msra.mxu1 %v1637_v4 }
  0x21   :  { %1310 = vmatprep.subr.mxu1 %v1547_v0 }
  0xd9   :  { %v127_v7 = vpop.f32.mrf.mxu1 }
  0xda   :  { %v131_v8 = vadd.f32 %v127_v7, %v56_v6 }
  0xdb   :  { %v1287_v9 = vpop.f32.mrf.mxu1 }
  0xdc   :  { %v1201_v10 = vmul.f32 -1.442695, %v131_v8 }
  0xde   :  { %1398 = vpow2.f32 %v1201_v10  ;;  %v400_v10 = vsel %vm399_vm9, 1, %v1549_v15 }
  0xdf   :  { %1400 = vtanh.f32 %v131_v8 }
  0xeb   :  { %v1399_v11 = vpop.eup %1398 }
  0xec   :  { %v136_v12 = vadd.f32 1.0, %v1399_v11  ;;  %v1401_v17 = vpop.eup %1400 }
  0xee   :  { %1402 = vrcp.f32 %v136_v12 }
  0xfb   :  { %v1403_v18 = vpop.eup %1402 }
  0xfc   :  { %v139_v19 = vsel %vm1664_vm4, %v1401_v17, %v1403_v18 }
  0xfd   :  { %146 = vrot.lane.b32.xlu0 %v139_v19, %s1550_s2 }
 0x101   :  { %141 = vrot.lane.b32.xlu0 %v55_v20, %s1551_s22 }
 0x16f   :  { %v147_v22 = vpop.permute.xlu0 %146 }
 0x170   :  { %v149_v23 = vmul.f32 %v147_v22, %v139_v19 }
 0x172   :  { %151 = vrot.lane.b32.xlu1 %v149_v23, %s1551_s22 }
 0x173   :  { %v142_v25 = vpop.permute.xlu0 %141 }
 0x174   :  { %v144_v26 = vmul.f32 %v142_v25, %v139_v19 }
 0x176   :  { %164 = vperm.xlu1 %1396, %v162_v24  }
 0x17a   :  { %173 = vrot.lane.b32.xlu1 %v54_v5, %s1552_s25 }
 0x1e4   :  { %v152_v27 = vpop.permute.xlu1 %151 }
 0x1e5   :  { %v154_v28 = vadd.f32 %v152_v27, %v144_v26  ;;  %v415_v26 = vld [vmem:[#allocation2 + $0x18] sm:$0xff] }
 0x1e7   :  { %1404 = vtanh.f32 %v154_v28 }
 0x1f1   :  { %v1684_v30 = vpop.permute.xlu1 %164 }
 0x1f2   :  { %vm166_vm6 = vcmp.eq.s32.totalorder %v1684_v30, 1 }
 0x1f3   :  { %v177_v49 = vsel %vm166_vm6, %v154_v28, %v142_v25 }
 0x1f4   :  { %v1405_v29 = vpop.eup %1404 }
 0x1f5   :  { %157 = vrot.lane.b32.xlu0 %v1405_v29, %s1550_s2  ;;  %v174_v32 = vpop.permute.xlu1 %173 }
 0x267   :  { %v158_v31 = vpop.permute.xlu0 %157 }
 0x268   :  { %v1686_v33 = vmul.f32 %v158_v31, %v139_v19 }
 0x26a   :  { %v176_v34 = vsel %vm166_vm6, %v1686_v33, %v174_v32 }
 0x26b   :  { %181 = vrot.lane.b32.xlu0 %v176_v34, %s1551_s22 }
 0x2dd   :  { %v182_v35 = vpop.permute.xlu0 %181 }
 0x2de   :  { %1297 = vmatmul.mubr.msk.f32.vlgmr.msra.gmra.mxu1 %vm57_vm1, %v182_v35 }
 0x2df   :  { %1311 = vmatpush3.msra.mxu1 %v1615_v1  ;;  %1318 = vmatprep.mubr.msk.f32.mxu1 %vm1548_vm0, %v1547_v0 }
 0x2e0   :  { %1312 = vmatprep.subr.mxu1 %v1547_v0 }
 0x2e1   :  { %1313 = vmatpush3.msra.mxu1 %v1620_v2 }
 0x2e2   :  { %1314 = vmatprep.subr.mxu1 %v1547_v0 }
 0x2e3   :  { %1315 = vmatpush3.msra.mxu1 %v1628_v3 }
 0x2e4   :  { %1316 = vmatprep.subr.mxu1 %v1547_v0 }
 0x2e5   :  { %1317 = vmatpush3.msra.mxu1 %v1637_v4 }
 0x2e6   :  { %1332 = vmatprep.subr.mxu1 %v1547_v0 }
 0x39e   :  { %v251_v37 = vpop.f32.mrf.mxu1 }
 0x39f   :  { %v255_v38 = vadd.f32 %v251_v37, %v179_v36 }
 0x3a0   :  { %v1298_v39 = vpop.f32.mrf.mxu1 }
 0x3a1   :  { %v1203_v40 = vmul.f32 -1.442695, %v255_v38 }
 0x3a3   :  { %1406 = vpow2.f32 %v1203_v40 }
 0x3a4   :  { %1408 = vtanh.f32 %v255_v38  ;;  %v518_v38 = vsel %vm517_vm11, 1, %v1549_v15 }
 0x3b0   :  { %v1407_v41 = vpop.eup %1406 }
 0x3b1   :  { %v260_v42 = vadd.f32 1.0, %v1407_v41  ;;  %v1409_v43 = vpop.eup %1408 }
 0x3b3   :  { %1410 = vrcp.f32 %v260_v42 }
 0x3c0   :  { %v1411_v44 = vpop.eup %1410 }
 0x3c1   :  { %v263_v45 = vsel %vm1664_vm4, %v1409_v43, %v1411_v44 }
 0x3c2   :  { %266 = vrot.lane.b32.xlu1 %v263_v45, %s1550_s2  ;;  %v264_v50 = vmul.f32 %v263_v45, %v177_v49 }
 0x3c6   :  { %284 = vperm.xlu1 %1396, %v282_v46  }
 0x434   :  { %v267_v47 = vpop.permute.xlu1 %266 }
 0x435   :  { %v269_v48 = vmul.f32 %v267_v47, %v263_v45 }
 0x437   :  { %271 = vrot.lane.b32.xlu0 %v269_v48, %s1551_s22 }
 0x441   :  { %v1713_v54 = vpop.permute.xlu1 %284 }
 0x442   :  { %vm286_vm8 = vcmp.eq.s32.totalorder %v1713_v54, 1 }
 0x4a9   :  { %v272_v51 = vpop.permute.xlu0 %271 }
 0x4aa   :  { %v274_v52 = vadd.f32 %v272_v51, %v264_v50  ;;  %v533_v51 = vld [vmem:[#allocation2 + $0x20] sm:$0xff] }
 0x4ac   :  { %1412 = vtanh.f32 %v274_v52  ;;  %v295_v13 = vsel %vm286_vm8, %v274_v52, %v177_v49 }
 0x4b9   :  { %v1413_v53 = vpop.eup %1412 }
 0x4ba   :  { %277 = vrot.lane.b32.xlu0 %v1413_v53, %s1550_s2 }
 0x52c   :  { %v278_v55 = vpop.permute.xlu0 %277 }
 0x52d   :  { %v1715_v56 = vmul.f32 %v278_v55, %v263_v45 }
 0x52f   :  { %v294_v57 = vsel %vm286_vm8, %v1715_v56, %v176_v34 }
 0x530   :  { %299 = vrot.lane.b32.xlu1 %v294_v57, %s1551_s22 }
 0x5a2   :  { %v300_v58 = vpop.permute.xlu1 %299 }
 0x5a3   :  { %1308 = vmatmul.mubr.msk.f32.vlgmr.msra.gmra.mxu0 %vm57_vm1, %v300_v58 }
 0x5a4   :  { %1322 = vmatpush3.msra.mxu0 %v1615_v1  ;;  %1329 = vmatprep.mubr.msk.f32.mxu0 %vm1548_vm0, %v1547_v0 }
 0x5a5   :  { %1323 = vmatprep.subr.mxu0 %v1547_v0 }
 0x5a6   :  { %1324 = vmatpush3.msra.mxu0 %v1620_v2 }
 0x5a7   :  { %1325 = vmatprep.subr.mxu0 %v1547_v0 }
 0x5a8   :  { %1326 = vmatpush3.msra.mxu0 %v1628_v3 }
 0x5a9   :  { %1327 = vmatprep.subr.mxu0 %v1547_v0 }
 0x5aa   :  { %1328 = vmatpush3.msra.mxu0 %v1637_v4 }
 0x5ab   :  { %1343 = vmatprep.subr.mxu0 %v1547_v0 }
 0x663   :  { %v369_v60 = vpop.f32.mrf.mxu0 }
 0x664   :  { %v373_v61 = vadd.f32 %v369_v60, %v297_v59 }
 0x665   :  { %v1309_v62 = vpop.f32.mrf.mxu0 }
 0x666   :  { %v1205_v63 = vmul.f32 -1.442695, %v373_v61 }
 0x668   :  { %1414 = vpow2.f32 %v1205_v63  ;;  %v636_v63 = vsel %vm635_vm13, 1, %v1549_v15 }
 0x669   :  { %1416 = vtanh.f32 %v373_v61 }
 0x675   :  { %v1415_v5 = vpop.eup %1414 }
 0x676   :  { %v378_v6 = vadd.f32 1.0, %v1415_v5  ;;  %v1417_v7 = vpop.eup %1416 }
 0x678   :  { %1418 = vrcp.f32 %v378_v6 }
 0x685   :  { %v1419_v8 = vpop.eup %1418 }
 0x686   :  { %v381_v9 = vsel %vm1664_vm4, %v1417_v7, %v1419_v8 }
 0x687   :  { %384 = vrot.lane.b32.xlu0 %v381_v9, %s1550_s2  ;;  %v382_v14 = vmul.f32 %v381_v9, %v295_v13 }
 0x68b   :  { %402 = vperm.xlu0 %1397, %v400_v10  }
 0x6f9   :  { %v385_v11 = vpop.permute.xlu0 %384 }
 0x6fa   :  { %v387_v12 = vmul.f32 %v385_v11, %v381_v9 }
 0x6fc   :  { %389 = vrot.lane.b32.xlu1 %v387_v12, %s1551_s22 }
 0x706   :  { %v1742_v20 = vpop.permute.xlu0 %402 }
 0x707   :  { %vm404_vm10 = vcmp.eq.s32.totalorder %v1742_v20, 1 }
 0x76e   :  { %v390_v17 = vpop.permute.xlu1 %389 }
 0x76f   :  { %v392_v18 = vadd.f32 %v390_v17, %v382_v14 }
 0x771   :  { %1420 = vtanh.f32 %v392_v18  ;;  %v413_v41 = vsel %vm404_vm10, %v392_v18, %v295_v13 }
 0x77e   :  { %v1421_v19 = vpop.eup %1420 }
 0x77f   :  { %395 = vrot.lane.b32.xlu1 %v1421_v19, %s1550_s2  ;;  %v651_v19 = vld [vmem:[#allocation2 + $0x28] sm:$0xff] }
 0x7f1   :  { %v396_v22 = vpop.permute.xlu1 %395 }
 0x7f2   :  { %v1744_v23 = vmul.f32 %v396_v22, %v381_v9 }
 0x7f4   :  { %v412_v24 = vsel %vm404_vm10, %v1744_v23, %v294_v57 }
 0x7f5   :  { %417 = vrot.lane.b32.xlu1 %v412_v24, %s1551_s22 }
 0x867   :  { %v418_v25 = vpop.permute.xlu1 %417 }
 0x868   :  { %1319 = vmatmul.mubr.msk.f32.vlgmr.msra.gmra.mxu1 %vm57_vm1, %v418_v25 }
 0x869   :  { %1333 = vmatpush3.msra.mxu1 %v1615_v1  ;;  %1340 = vmatprep.mubr.msk.f32.mxu1 %vm1548_vm0, %v1547_v0 }
 0x86a   :  { %1334 = vmatprep.subr.mxu1 %v1547_v0 }
 0x86b   :  { %1335 = vmatpush3.msra.mxu1 %v1620_v2 }
 0x86c   :  { %1336 = vmatprep.subr.mxu1 %v1547_v0 }
 0x86d   :  { %1337 = vmatpush3.msra.mxu1 %v1628_v3 }
 0x86e   :  { %1338 = vmatprep.subr.mxu1 %v1547_v0 }
 0x86f   :  { %1339 = vmatpush3.msra.mxu1 %v1637_v4 }
 0x870   :  { %1354 = vmatprep.subr.mxu1 %v1547_v0 }
 0x928   :  { %v487_v27 = vpop.f32.mrf.mxu1 }
 0x929   :  { %v491_v28 = vadd.f32 %v487_v27, %v415_v26 }
 0x92a   :  { %v1320_v29 = vpop.f32.mrf.mxu1 }
 0x92b   :  { %v1207_v31 = vmul.f32 -1.442695, %v491_v28 }
 0x92d   :  { %1422 = vpow2.f32 %v1207_v31 }
 0x92e   :  { %1424 = vtanh.f32 %v491_v28 }
 0x93a   :  { %v1423_v32 = vpop.eup %1422 }
 0x93b   :  { %v496_v34 = vadd.f32 1.0, %v1423_v32  ;;  %v1425_v35 = vpop.eup %1424 }
 0x93d   :  { %1426 = vrcp.f32 %v496_v34 }
 0x94a   :  { %v1427_v36 = vpop.eup %1426 }
 0x94b   :  { %v499_v37 = vsel %vm1664_vm4, %v1425_v35, %v1427_v36 }
 0x94c   :  { %502 = vrot.lane.b32.xlu0 %v499_v37, %s1550_s2  ;;  %v500_v42 = vmul.f32 %v499_v37, %v413_v41 }
 0x950   :  { %520 = vperm.xlu0 %1397, %v518_v38  }
 0x9be   :  { %v503_v39 = vpop.permute.xlu0 %502 }
 0x9bf   :  { %v505_v40 = vmul.f32 %v503_v39, %v499_v37 }
 0x9c1   :  { %507 = vrot.lane.b32.xlu1 %v505_v40, %s1551_s22 }
 0x9cb   :  { %v1771_v46 = vpop.permute.xlu0 %520 }
 0x9cc   :  { %vm522_vm12 = vcmp.eq.s32.totalorder %v1771_v46, 1 }
 0xa33   :  { %v508_v43 = vpop.permute.xlu1 %507 }
 0xa34   :  { %v510_v44 = vadd.f32 %v508_v43, %v500_v42  ;;  %v769_v42 = vld [vmem:[#allocation2 + $0x30] sm:$0xff] }
 0xa36   :  { %1428 = vtanh.f32 %v510_v44  ;;  %v531_v7 = vsel %vm522_vm12, %v510_v44, %v413_v41 }
 0xa43   :  { %v1429_v45 = vpop.eup %1428 }
 0xa44   :  { %513 = vrot.lane.b32.xlu1 %v1429_v45, %s1550_s2 }
 0xab6   :  { %v514_v47 = vpop.permute.xlu1 %513 }
 0xab7   :  { %v1773_v48 = vmul.f32 %v514_v47, %v499_v37 }
 0xab9   :  { %v530_v49 = vsel %vm522_vm12, %v1773_v48, %v412_v24 }
 0xaba   :  { %535 = vrot.lane.b32.xlu0 %v530_v49, %s1551_s22 }
 0xb2c   :  { %v536_v50 = vpop.permute.xlu0 %535 }
 0xb2d   :  { %1330 = vmatmul.mubr.msk.f32.vlgmr.msra.gmra.mxu0 %vm57_vm1, %v536_v50 }
 0xb2e   :  { %1344 = vmatpush3.msra.mxu0 %v1615_v1  ;;  %1351 = vmatprep.mubr.msk.f32.mxu0 %vm1548_vm0, %v1547_v0 }
 0xb2f   :  { %1345 = vmatprep.subr.mxu0 %v1547_v0 }
 0xb30   :  { %1346 = vmatpush3.msra.mxu0 %v1620_v2 }
 0xb31   :  { %1347 = vmatprep.subr.mxu0 %v1547_v0 }
 0xb32   :  { %1348 = vmatpush3.msra.mxu0 %v1628_v3 }
 0xb33   :  { %1349 = vmatprep.subr.mxu0 %v1547_v0 }
 0xb34   :  { %1350 = vmatpush3.msra.mxu0 %v1637_v4 }
 0xbed   :  { %v605_v52 = vpop.f32.mrf.mxu0 }
 0xbee   :  { %v609_v53 = vadd.f32 %v605_v52, %v533_v51 }
 0xbef   :  { %v1331_v55 = vpop.f32.mrf.mxu0 }
 0xbf0   :  { %v1209_v57 = vmul.f32 -1.442695, %v609_v53  ;;  %v872_v55 = vsel %vm871_vm2, 1, %v1549_v15 }
 0xbf2   :  { %1430 = vpow2.f32 %v1209_v57 }
 0xbf3   :  { %1432 = vtanh.f32 %v609_v53 }
 0xbff   :  { %v1431_v58 = vpop.eup %1430 }
 0xc00   :  { %v614_v59 = vadd.f32 1.0, %v1431_v58  ;;  %v1433_v60 = vpop.eup %1432 }
 0xc02   :  { %1434 = vrcp.f32 %v614_v59 }
 0xc0f   :  { %v1435_v61 = vpop.eup %1434 }
 0xc10   :  { %v617_v62 = vsel %vm1664_vm4, %v1433_v60, %v1435_v61 }
 0xc11   :  { %620 = vrot.lane.b32.xlu1 %v617_v62, %s1550_s2  ;;  %v618_v8 = vmul.f32 %v617_v62, %v531_v7 }
 0xc15   :  { %638 = vperm.xlu1 %1396, %v636_v63  }
 0xc83   :  { %v621_v5 = vpop.permute.xlu1 %620 }
 0xc84   :  { %v623_v6 = vmul.f32 %v621_v5, %v617_v62 }
 0xc86   :  { %625 = vrot.lane.b32.xlu0 %v623_v6, %s1551_s22 }
 0xc90   :  { %v1799_v12 = vpop.permute.xlu1 %638 }
 0xc91   :  { %vm640_vm14 = vcmp.eq.s32.totalorder %v1799_v12, 1 }
 0xcf8   :  { %v626_v9 = vpop.permute.xlu0 %625 }
 0xcf9   :  { %v628_v10 = vadd.f32 %v626_v9, %v618_v8 }
 0xcfb   :  { %1436 = vtanh.f32 %v628_v10  ;;  %v649_v31 = vsel %vm640_vm14, %v628_v10, %v531_v7  ;;  %v887_v10 = vld [vmem:[#allocation2 + $0x38] sm:$0xff] }
 0xd08   :  { %v1437_v11 = vpop.eup %1436 }
 0xd09   :  { %631 = vrot.lane.b32.xlu0 %v1437_v11, %s1550_s2 }
 0xd7b   :  { %v632_v13 = vpop.permute.xlu0 %631 }
 0xd7c   :  { %v1801_v14 = vmul.f32 %v632_v13, %v617_v62 }
 0xd7e   :  { %v648_v17 = vsel %vm640_vm14, %v1801_v14, %v530_v49  ;;  %v641_v16 = vsel %vm640_vm14, %v1801_v14, 0.0 }
 0xd7f   :  { %653 = vrot.lane.b32.xlu1 %v648_v17, %s1551_s22 }
 0xdf1   :  { %v654_v18 = vpop.permute.xlu1 %653 }
 0xdf2   :  { %1341 = vmatmul.mubr.msk.f32.vlgmr.msra.gmra.mxu1 %vm57_vm1, %v654_v18 }
 0xdf3   :  { %1355 = vmatpush3.msra.mxu1 %v1615_v1  ;;  %1362 = vmatprep.mubr.msk.f32.mxu1 %vm1548_vm0, %v1547_v0 }
 0xdf4   :  { %1356 = vmatprep.subr.mxu1 %v1547_v0 }
 0xdf5   :  { %1357 = vmatpush3.msra.mxu1 %v1620_v2 }
 0xdf6   :  { %1358 = vmatprep.subr.mxu1 %v1547_v0 }
 0xdf7   :  { %1359 = vmatpush3.msra.mxu1 %v1628_v3 }
 0xdf8   :  { %1360 = vmatprep.subr.mxu1 %v1547_v0  ;;  %v754_v0 = vsel %vm753_vm15, 1, %v1549_v15 }
 0xdf9   :  { %1361 = vmatpush3.msra.mxu1 %v1637_v4 }
 0xeb2   :  { %v723_v22 = vpop.f32.mrf.mxu1 }
 0xeb3   :  { %v727_v24 = vadd.f32 %v723_v22, %v651_v19 }
 0xeb4   :  { %v1342_v25 = vpop.f32.mrf.mxu1 }
 0xeb5   :  { %v1211_v1 = vmul.f32 -1.442695, %v727_v24 }
 0xeb7   :  { %1438 = vpow2.f32 %v1211_v1 }
 0xeb8   :  { %1440 = vtanh.f32 %v727_v24 }
 0xec4   :  { %v1439_v26 = vpop.eup %1438 }
 0xec5   :  { %v732_v27 = vadd.f32 1.0, %v1439_v26  ;;  %v1441_v28 = vpop.eup %1440  ;;  %v990_v26 = vsel %vm989_vm5, 1, %v1549_v15 }
 0xec7   :  { %1442 = vrcp.f32 %v732_v27  ;;  %v167_v27 = vsel %vm166_vm6, %v1686_v33, 0.0 }
 0xed4   :  { %v1443_v2 = vpop.eup %1442 }
 0xed5   :  { %v735_v3 = vsel %vm1664_vm4, %v1441_v28, %v1443_v2  ;;  %v405_v28 = vsel %vm404_vm10, %v1744_v23, 0.0 }
 0xed6   :  { %738 = vrot.lane.b32.xlu0 %v735_v3, %s1550_s2  ;;  %v736_v32 = vmul.f32 %v735_v3, %v649_v31 }
 0xeda   :  { %756 = vperm.xlu0 %1397, %v754_v0  }
 0xf48   :  { %v739_v4 = vpop.permute.xlu0 %738 }
 0xf49   :  { %v741_v29 = vmul.f32 %v739_v4, %v735_v3 }
 0xf4b   :  { %743 = vrot.lane.b32.xlu1 %v741_v29, %s1551_s22 }
 0xf55   :  { %v1827_v37 = vpop.permute.xlu0 %756 }
 0xf56   :  { %vm758_vm0 = vcmp.eq.s32.totalorder %v1827_v37, 1 }
 0xfbd   :  { %v744_v34 = vpop.permute.xlu1 %743 }
 0xfbe   :  { %v746_v35 = vadd.f32 %v744_v34, %v736_v32  ;;  %v1012_v32 = vld [vmem:[%s1940_s5 + $0x10] sm:$0xff]  ;;  %v1011_v34 = vld [vmem:[%s1940_s5 + $0x8] sm:$0xff] }
 0xfc0   :  { %1444 = vtanh.f32 %v746_v35  ;;  %v767_v59 = vsel %vm758_vm0, %v746_v35, %v649_v31  ;;  %v1013_v31 = vld [vmem:[%s1940_s5 + $0x18] sm:$0xff]  ;;  %v1010_v35 = vld [vmem:[%s1940_s5] sm:$0xff] }
 0xfc1   :  { %1365 = vmatprep.subr.mxu0 %v1013_v31 }
 0xfcd   :  { %v1445_v36 = vpop.eup %1444 }
 0xfce   :  { %749 = vrot.lane.b32.xlu1 %v1445_v36, %s1550_s2 }
0x1040   :  { %v750_v38 = vpop.permute.xlu1 %749 }
0x1041   :  { %v1829_v39 = vmul.f32 %v750_v38, %v735_v3  ;;  %v287_v38 = vsel %vm286_vm8, %v1715_v56, 0.0 }
0x1043   :  { %v766_v40 = vsel %vm758_vm0, %v1829_v39, %v648_v17 }
0x1044   :  { %771 = vrot.lane.b32.xlu0 %v766_v40, %s1551_s22 }
0x10b6   :  { %v772_v41 = vpop.permute.xlu0 %771 }
0x10b7   :  { %1352 = vmatmul.mubr.msk.f32.vlgmr.msra.gmra.mxu0 %vm57_vm1, %v772_v41  ;;  %v759_v41 = vsel %vm758_vm0, %v1829_v39, 0.0 }
0x10b8   :  { %1366 = vmatpush3.msra.mxu0 %v1013_v31 }
0x10b9   :  { %1367 = vmatprep.subr.mxu0 %v1012_v32 }
0x10ba   :  { %1368 = vmatpush3.msra.mxu0 %v1012_v32 }
0x10bb   :  { %1369 = vmatprep.subr.mxu0 %v1011_v34 }
0x10bc   :  { %1370 = vmatpush3.msra.mxu0 %v1011_v34 }
0x10bd   :  { %1371 = vmatprep.subr.mxu0 %v1010_v35 }
0x10be   :  { %1372 = vmatpush3.msra.mxu0 %v1010_v35 }
0x1177   :  { %v841_v43 = vpop.f32.mrf.mxu0 }
0x1178   :  { %v845_v44 = vadd.f32 %v841_v43, %v769_v42 }
0x1179   :  { %v1353_v45 = vpop.f32.mrf.mxu0 }
0x117a   :  { %v1213_v47 = vmul.f32 -1.442695, %v845_v44 }
0x117c   :  { %1446 = vpow2.f32 %v1213_v47 }
0x117d   :  { %1448 = vtanh.f32 %v845_v44 }
0x1189   :  { %v1447_v49 = vpop.eup %1446 }
0x118a   :  { %v850_v50 = vadd.f32 1.0, %v1447_v49  ;;  %v1449_v51 = vpop.eup %1448 }
0x118c   :  { %1450 = vrcp.f32 %v850_v50 }
0x1199   :  { %v1451_v52 = vpop.eup %1450 }
0x119a   :  { %v853_v53 = vsel %vm1664_vm4, %v1449_v51, %v1451_v52  ;;  %v1216_v52 = vld [vmem:[%s1941_s6] ss:$0 sm:$0xff] }
0x119b   :  { %856 = vrot.lane.b32.xlu1 %v853_v53, %s1550_s2  ;;  %v854_v60 = vmul.f32 %v853_v53, %v767_v59 }
0x119f   :  { %874 = vperm.xlu1 %1396, %v872_v55  }
0x120d   :  { %v857_v57 = vpop.permute.xlu1 %856 }
0x120e   :  { %v859_v58 = vmul.f32 %v857_v57, %v853_v53 }
0x1210   :  { %861 = vrot.lane.b32.xlu0 %v859_v58, %s1551_s22 }
0x121a   :  { %v875_v5 = vpop.permute.xlu1 %874 }
0x121b   :  { %vm876_vm3 = vcmp.eq.s32.totalorder %v875_v5, 1 }
0x1282   :  { %v862_v61 = vpop.permute.xlu0 %861 }
0x1283   :  { %v864_v62 = vadd.f32 %v862_v61, %v854_v60 }
0x1285   :  { %1452 = vtanh.f32 %v864_v62  ;;  %v885_v3 = vsel %vm876_vm3, %v864_v62, %v767_v59 }
0x1292   :  { %v1453_v63 = vpop.eup %1452 }
0x1293   :  { %867 = vrot.lane.b32.xlu0 %v1453_v63, %s1550_s2 }
0x1305   :  { %v868_v6 = vpop.permute.xlu0 %867 }
0x1306   :  { %v870_v7 = vmul.f32 %v868_v6, %v853_v53 }
0x1308   :  { %v884_v8 = vsel %vm876_vm3, %v870_v7, %v766_v40  ;;  %v877_v15 = vsel %vm876_vm3, %v870_v7, 0.0  ;;  %v523_v40 = vsel %vm522_vm12, %v1773_v48, 0.0 }
0x1309   :  { %889 = vrot.lane.b32.xlu1 %v884_v8, %s1551_s22 }
0x137b   :  { %v890_v9 = vpop.permute.xlu1 %889 }
0x137c   :  { %1363 = vmatmul.mubr.msk.f32.vlgmr.msra.gmra.mxu1 %vm57_vm1, %v890_v9 }
0x143c   :  { %v959_v11 = vpop.f32.mrf.mxu1 }
0x143d   :  { %v963_v13 = vadd.f32 %v959_v11, %v887_v10 }
0x143e   :  { %v1364_v17 = vpop.f32.mrf.mxu1 }
0x143f   :  { %v1215_v18 = vmul.f32 -1.442695, %v963_v13 }
0x1441   :  { %1454 = vpow2.f32 %v1215_v18 }
0x1442   :  { %1456 = vtanh.f32 %v963_v13 }
0x144e   :  { %v1455_v19 = vpop.eup %1454 }
0x144f   :  { %v968_v22 = vadd.f32 1.0, %v1455_v19  ;;  %v1457_v24 = vpop.eup %1456 }
0x1451   :  { %1458 = vrcp.f32 %v968_v22 }
0x145e   :  { %v1459_v25 = vpop.eup %1458 }
0x145f   :  { %v971_v1 = vsel %vm1664_vm4, %v1457_v24, %v1459_v25 }
0x1460   :  { %974 = vrot.lane.b32.xlu0 %v971_v1, %s1550_s2  ;;  %v972_v0 = vmul.f32 %v971_v1, %v885_v3 }
0x1464   :  { %992 = vperm.xlu0 %1397, %v990_v26  }
0x1468   :  { %169 = vrot.lane.b32.xlu0 %v167_v27, %s1551_s22 }
0x146c   :  { %407 = vrot.lane.b32.xlu0 %v405_v28, %s1551_s22 }
0x1470   :  { %643 = vrot.lane.b32.xlu0 %v641_v16, %s1551_s22 }
0x1474   :  { %879 = vrot.lane.b32.xlu0 %v877_v15, %s1551_s22 }
0x14d2   :  { %v975_v21 = vpop.permute.xlu0 %974 }
0x14d3   :  { %v977_v30 = vmul.f32 %v975_v21, %v971_v1 }
0x14d5   :  { %979 = vrot.lane.b32.xlu1 %v977_v30, %s1551_s22 }
0x14df   :  { %v993_v33 = vpop.permute.xlu0 %992 }
0x14e0   :  { %vm994_vm4 = vcmp.eq.s32.totalorder %v993_v33, 1 }
0x14e3   :  { %v170_v2 = vpop.permute.xlu0 %169 }
0x14e4   :  { %172 = vst.msk [vmem:[#allocation6] sm:$0xff] %vm57_vm1, %v170_v2 }
0x14e7   :  { %v408_v20 = vpop.permute.xlu0 %407 }
0x14e8   :  { %411 = vst.msk [vmem:[#allocation6 + $0x10] sm:$0xff] %vm57_vm1, %v408_v20 }
0x14eb   :  { %v644_v23 = vpop.permute.xlu0 %643  ;;  %v1002_v12 = vld [vmem:[#allocation6] sm:$0xff] }
0x14ec   :  { %647 = vst.msk [vmem:[#allocation6 + $0x20] sm:$0xff] %vm57_vm1, %v644_v23  ;;  %1373 = vmatprep.mubr.msk.f32.mxu0 %vm57_vm1, %v1002_v12 }
0x14ef   :  { %v880_v14 = vpop.permute.xlu0 %879  ;;  %v1004_v37 = vld [vmem:[#allocation6 + $0x10] sm:$0xff] }
0x14f0   :  { %883 = vst.msk [vmem:[#allocation6 + $0x30] sm:$0xff] %vm57_vm1, %v880_v14 }
0x14f3   :  { %v1006_v45 = vld [vmem:[#allocation6 + $0x20] sm:$0xff] }
0x14f7   :  { %v1008_v49 = vld [vmem:[#allocation6 + $0x30] sm:$0xff] }
0x1547   :  { %v980_v4 = vpop.permute.xlu1 %979 }
0x1548   :  { %v982_v29 = vadd.f32 %v980_v4, %v972_v0 }
0x154a   :  { %1460 = vtanh.f32 %v982_v29 }
0x1557   :  { %v1461_v36 = vpop.eup %1460 }
0x1558   :  { %985 = vrot.lane.b32.xlu1 %v1461_v36, %s1550_s2 }
0x155c   :  { %289 = vrot.lane.b32.xlu1 %v287_v38, %s1551_s22 }
0x1560   :  { %525 = vrot.lane.b32.xlu1 %v523_v40, %s1551_s22 }
0x1564   :  { %761 = vrot.lane.b32.xlu1 %v759_v41, %s1551_s22 }
0x15ca   :  { %v986_v42 = vpop.permute.xlu1 %985 }
0x15cb   :  { %v988_v43 = vmul.f32 %v986_v42, %v971_v1 }
0x15cd   :  { %v995_v44 = vsel %vm994_vm4, %v988_v43, 0.0 }
0x15ce   :  { %997 = vrot.lane.b32.xlu1 %v995_v44, %s1551_s22  ;;  %v290_v54 = vpop.permute.xlu1 %289 }
0x15cf   :  { %293 = vst.msk [vmem:[#allocation6 + $0x8] sm:$0xff] %vm57_vm1, %v290_v54 }
0x15d2   :  { %v526_v56 = vpop.permute.xlu1 %525 }
0x15d3   :  { %529 = vst.msk [vmem:[#allocation6 + $0x18] sm:$0xff] %vm57_vm1, %v526_v56 }
0x15d6   :  { %v762_v46 = vpop.permute.xlu1 %761  ;;  %v1003_v48 = vld [vmem:[#allocation6 + $0x8] sm:$0xff] }
0x15d7   :  { %765 = vst.msk [vmem:[#allocation6 + $0x28] sm:$0xff] %vm57_vm1, %v762_v46  ;;  %1374 = vmatmul.mubr.msk.f32.vlgmr.msra.gmra.mxu0 %vm57_vm1, %v1003_v48 }
0x15d8   :  { %1376 = vmatprep.mubr.msk.f32.mxu0 %vm57_vm1, %v1004_v37 }
0x15da   :  { %v1005_v39 = vld [vmem:[#allocation6 + $0x18] sm:$0xff] }
0x15db   :  { %1377 = vmatmul.mubr.msk.f32.gmra.mxu0 %vm57_vm1, %v1005_v39 }
0x15dc   :  { %1379 = vmatprep.mubr.msk.f32.mxu0 %vm57_vm1, %v1006_v45 }
0x15de   :  { %v1007_v47 = vld [vmem:[#allocation6 + $0x28] sm:$0xff] }
0x15df   :  { %1380 = vmatmul.mubr.msk.f32.gmra.mxu0 %vm57_vm1, %v1007_v47 }
0x15e0   :  { %1382 = vmatprep.mubr.msk.f32.mxu0 %vm57_vm1, %v1008_v49 }
0x1640   :  { %v998_v50 = vpop.permute.xlu1 %997 }
0x1641   :  { %1001 = vst.msk [vmem:[#allocation6 + $0x38] sm:$0xff] %vm57_vm1, %v998_v50 }
0x1648   :  { %v1009_v51 = vld [vmem:[#allocation6 + $0x38] sm:$0xff] }
0x1649   :  { %1383 = vmatmul.mubr.msk.f32.gmra.mxu0 %vm57_vm1, %v1009_v51 }
0x1697   :  { %v1375_v53 = vpop.f32.mrf.mxu0 }
0x1698   :  { %v1117_v55 = vadd.f32 %v1375_v53, %v1216_v52 }
0x1699   :  { %v1111_v57 = vpop.f32.mrf.mxu0 }
0x169a   :  { %1462 = vtanh.f32 %v1117_v55  ;;  %v1112_v58 = vadd.f32 %v1216_v52, %v1111_v57 }
0x169b   :  { %v1378_v59 = vpop.f32.mrf.mxu0 }
0x169c   :  { %1464 = vtanh.f32 %v1112_v58  ;;  %v1127_v60 = vadd.f32 %v1378_v59, %v1216_v52 }
0x169d   :  { %v1121_v61 = vpop.f32.mrf.mxu0 }
0x169e   :  { %1509 = shalt.err (!%p1506_p9)
}
0x169f   :  { %1190 = dma.vmem_to_hbm [thread:$0]  %s1185_s0, 1024, %s1943_s8, [#allocation7], %s1545_s30, %s1545_s30, %s1546_s9   ;;  %1466 = vtanh.f32 %v1127_v60  ;;  %v1122_v62 = vadd.f32 %v1216_v52, %v1121_v61  ;;  %v1381_v63 = vpop.f32.mrf.mxu0  ;;  %vm1158_vm1 = vcmask 130048  }
0x16a0   :  { %v1137_v5 = vadd.f32 %v1381_v63, %v1216_v52  ;;  %s1554_s8 = smov [#allocation5]  }
0x16a1   :  { %1468 = vtanh.f32 %v1122_v62  ;;  %v1131_v6 = vpop.f32.mrf.mxu0  ;;  %s1172_s16 = sshll.u32 %s1554_s8, 4  ;;  %s1173_s16 = int_to_ptr.vmem [resolvable:$true] %s1172_s16 }
0x16a2   :  { %1470 = vtanh.f32 %v1137_v5  ;;  %v1132_v7 = vadd.f32 %v1216_v52, %v1131_v6  ;;  %s1518_s17 = scalar_lea.vmem %s1173_s16, 1024  ;;  %p1523_p11 = scmp.lt.s32.totalorder %s1173_s16, %s1173_s16 }
0x16a3   :  { %p1519_p10 = scmp.ne.s32.totalorder %s1173_s16, %s1518_s17  ;;  %p1524_p12 = scmp.lt.s32.totalorder %s1518_s17, %s1518_s17 }
0x16a4   :  { %1472 = vtanh.f32 %v1132_v7 }
0x16a5   :  { %p1525_p13 = por %p1524_p12, %p1523_p11 }
0x16a7   :  { %v1463_v8 = vpop.eup %1462  ;;  %p1526_p0 = pnand %p1525_p13, %p1519_p10 }
0x16a8   :  { %1160 = vst.msk [vmem:[#allocation5 + $0x8] sm:$0xff] %vm1158_vm1, %v1463_v8 }
0x16a9   :  { %v1465_v9 = vpop.eup %1464 }
0x16aa   :  { %1159 = vst.msk [vmem:[#allocation5] sm:$0xff] %vm1158_vm1, %v1465_v9 }
0x16ac   :  { %v1467_v10 = vpop.eup %1466 }
0x16ad   :  { %1162 = vst.msk [vmem:[#allocation5 + $0x18] sm:$0xff] %vm1158_vm1, %v1467_v10 }
0x16ae   :  { %v1469_v11 = vpop.eup %1468 }
0x16af   :  { %1161 = vst.msk [vmem:[#allocation5 + $0x10] sm:$0xff] %vm1158_vm1, %v1469_v11  ;;  %v1471_v13 = vpop.eup %1470 }
0x16b0   :  { %1164 = vst.msk [vmem:[#allocation5 + $0x28] sm:$0xff] %vm1158_vm1, %v1471_v13 }
0x16b1   :  { %v1473_v17 = vpop.eup %1472 }
0x16b2   :  { %1163 = vst.msk [vmem:[#allocation5 + $0x20] sm:$0xff] %vm1158_vm1, %v1473_v17 }
0x1709   :  { %v1384_v18 = vpop.f32.mrf.mxu0 }
0x170a   :  { %v1147_v19 = vadd.f32 %v1384_v18, %v1216_v52 }
0x170b   :  { %v1141_v22 = vpop.f32.mrf.mxu0 }
0x170c   :  { %1474 = vtanh.f32 %v1147_v19  ;;  %v1142_v24 = vadd.f32 %v1216_v52, %v1141_v22 }
0x170e   :  { %1476 = vtanh.f32 %v1142_v24 }
0x1719   :  { %v1475_v25 = vpop.eup %1474 }
0x171a   :  { %1166 = vst.msk [vmem:[#allocation5 + $0x38] sm:$0xff] %vm1158_vm1, %v1475_v25 }
0x171b   :  { %v1477_v1 = vpop.eup %1476 }
0x171c   :  { %1165 = vst.msk [vmem:[#allocation5 + $0x30] sm:$0xff] %vm1158_vm1, %v1477_v1 }
0x171d   :  { %1529 = shalt.err (!%p1526_p0)
}
0x171e   :  { %1178 = dma.vmem_to_hbm [thread:$0]  %s1173_s16, 1024, %s1942_s7, [#allocation4], %s1545_s30, %s1545_s30, %s1546_s9  }
0x171f   :  { %1540 = dma.done.wait [#allocation4], 1024  }
0x1720   :  { %1541 = vsyncadd [#allocation4], 4294966272 }
0x1721   :  { %1542 = dma.done.wait [#allocation7], 1024  }
0x1722   :  { %1543 = vsyncadd [#allocation7], 4294966272 }
0x1723   :  { %1197 = vsyncpa [#allocation3], 1 }
0x1724   :  { %1198 = vsyncpa [#allocation4], 1 }
0x1725   :  { %1199 = vsyncpa [#allocation7], 1 }

</bundles_post_ra>
